<compile_context>
chip_gen: v5e
topology: v5e:2x2
jax: 0.10.0
libtpu: 0.0.40
codegen_flags: <defaults>
</compile_context>

<pallas_src>
import jax
import jax.numpy as jnp
from jax import lax
from jax.experimental import pallas as pl
from jax.experimental.pallas import tpu as pltpu

LANES = 128
VMEM_LIMIT = 32 * 1024 * 1024


# ----------------------------------------------------------------------------
# Small helpers
# ----------------------------------------------------------------------------
def _round_up(x, m):
    return (x + m - 1) // m * m


def _cdiv(a, b):
    return -(-a // b)


def _row_blocking(m, max_block, min_steps=2):
    """Pick (padded_rows, row_block): row_block is a multiple of 16 (bf16 packs 2
    rows/sublane -> unmasked stores), divides padded_rows, and when there is
    enough work yields >= min_steps grid steps so both v7x TensorCores are fed."""
    bm = min(max_block, max(16, _round_up(_cdiv(m, min_steps), 16)))
    mp = _round_up(m, bm)
    return mp, bm


def _pad_axis(x, axis, size):
    pad = size - x.shape[axis]
    if pad == 0:
        return x
    widths = [(0, 0)] * x.ndim
    widths[axis] = (0, pad)
    return jnp.pad(x, widths)


# ----------------------------------------------------------------------------
# Pallas kernels
# ----------------------------------------------------------------------------
def _conv_relu_pool_kernel(p_ref, w_ref, b_ref, o_ref):
    """p_ref: (4, BM, Kp) bf16 patch rows, quadrant-major (pool parity).

    One merged matmul over all 4 quadrants, then a VPU max epilogue:
        o = relu(max_q(p[q] @ w) + b) == maxpool2x2(relu(conv + b))
    (bias constant across quadrants, ReLU monotone)."""
    nq, bm, kp = p_ref.shape
    n = o_ref.shape[-1]
    p = p_ref[...].reshape(nq * bm, kp)          # leading-dim merge, layout-free
    acc = jnp.dot(p, w_ref[...], preferred_element_type=jnp.float32)
    acc = acc.reshape(nq, bm, n)
    pooled = jnp.maximum(jnp.maximum(acc[0], acc[1]),
                         jnp.maximum(acc[2], acc[3]))
    o_ref[...] = jnp.maximum(pooled + b_ref[...], 0.0).astype(o_ref.dtype)


def _mlp3_kernel(x_ref, w1_ref, b1_ref, w2_ref, b2_ref, w3_ref, b3_ref, o_ref):
    """Fused fc1+ReLU -> fc2+ReLU -> fc3, all operands resident in VMEM."""
    h = jnp.dot(x_ref[...], w1_ref[...], preferred_element_type=jnp.float32)
    h = jnp.maximum(h + b1_ref[...], 0.0).astype(jnp.bfloat16)
    h = jnp.dot(h, w2_ref[...], preferred_element_type=jnp.float32)
    h = jnp.maximum(h + b2_ref[...], 0.0).astype(jnp.bfloat16)
    h = jnp.dot(h, w3_ref[...], preferred_element_type=jnp.float32)
    o_ref[...] = (h + b3_ref[...]).astype(o_ref.dtype)


# ----------------------------------------------------------------------------
# pallas_call wrappers
# ----------------------------------------------------------------------------
def _conv_relu_pool_call(p4, w, b, bm):
    """p4: (4, MP, Kp) bf16 quadrant-major patches (rows already padded to MP);
    w: (Kp, 128) bf16; b: (1, 128) f32. Returns (MP, 128) bf16."""
    _, mp, kp = p4.shape
    n = w.shape[1]
    flops = 2 * 4 * mp * kp * n
    bytes_accessed = 4 * mp * kp * 2 + kp * n * 2 + n * 4 + mp * n * 2
    return pl.pallas_call(
        _conv_relu_pool_kernel,
        out_shape=jax.ShapeDtypeStruct((mp, n), jnp.bfloat16),
        grid_spec=pltpu.PrefetchScalarGridSpec(
            num_scalar_prefetch=0,
            grid=(mp // bm,),
            in_specs=[
                pl.BlockSpec((4, bm, kp), lambda i: (0, i, 0)),
                pl.BlockSpec((kp, n), lambda i: (0, 0)),
                pl.BlockSpec((1, n), lambda i: (0, 0)),
            ],
            out_specs=pl.BlockSpec((bm, n), lambda i: (i, 0)),
        ),
        compiler_params=pltpu.CompilerParams(
            dimension_semantics=("parallel",),
            vmem_limit_bytes=VMEM_LIMIT,
        ),
        cost_estimate=pl.CostEstimate(
            flops=flops, transcendentals=0, bytes_accessed=bytes_accessed),
    )(p4, w, b)


def mlp3(x, w1, b1, w2, b2, w3, b3, *, block_rows=2048):
    """x: (M, 400) bf16. Returns (M, 128) f32 (real logits in cols 0..9)."""
    m, k_real = x.shape
    k = w1.shape[0]                               # 512 (padded fc1 input)
    n = LANES
    mp, bm = _row_blocking(m, block_rows)
    xp = jnp.pad(x, ((0, mp - m), (0, k - k_real)))   # single fused row+K pad
    flops = 2 * mp * (k * n + n * n + n * n)
    bytes_accessed = mp * k * 2 + (k * n + 2 * n * n) * 2 + 3 * n * 4 + mp * n * 4
    out = pl.pallas_call(
        _mlp3_kernel,
        out_shape=jax.ShapeDtypeStruct((mp, n), jnp.float32),
        grid_spec=pltpu.PrefetchScalarGridSpec(
            num_scalar_prefetch=0,
            grid=(mp // bm,),
            in_specs=[
                pl.BlockSpec((bm, k), lambda i: (i, 0)),
                pl.BlockSpec((k, n), lambda i: (0, 0)),
                pl.BlockSpec((1, n), lambda i: (0, 0)),
                pl.BlockSpec((n, n), lambda i: (0, 0)),
                pl.BlockSpec((1, n), lambda i: (0, 0)),
                pl.BlockSpec((n, n), lambda i: (0, 0)),
                pl.BlockSpec((1, n), lambda i: (0, 0)),
            ],
            out_specs=pl.BlockSpec((bm, n), lambda i: (i, 0)),
        ),
        compiler_params=pltpu.CompilerParams(
            dimension_semantics=("parallel",),
            vmem_limit_bytes=VMEM_LIMIT,
        ),
        cost_estimate=pl.CostEstimate(
            flops=flops, transcendentals=0, bytes_accessed=bytes_accessed),
    )(xp, w1, b1, w2, b2, w3, b3)
    return out[:m]


# ----------------------------------------------------------------------------
# Host-side layout prep (cheap XLA ops, fuse around the kernels)
# ----------------------------------------------------------------------------
def conv_relu_pool(x_nhwc, w_kpn, b_1n, k, kp, *, block_rows=2048):
    """Fused Conv2d(valid) + bias + ReLU + 2x2 maxpool.

    x_nhwc is bf16 (cast happens before patch construction so the im2col glue
    moves half the bytes).  Patch rows are grouped quadrant-major by pool parity
    (i%2, j%2) so pooling is an elementwise max over 4 row slabs in-kernel.
    Returns (B, PH, PW, 128) bf16 with real channels in the leading lanes."""
    b, h, w, c = x_nhwc.shape
    oh, ow = h - k + 1, w - k + 1
    assert oh % 2 == 0 and ow % 2 == 0
    ph, pw = oh // 2, ow // 2
    m = b * ph * pw
    mp, bm = _row_blocking(m, block_rows)

    cols = [x_nhwc[:, di:di + oh, dj:dj + ow, :]
            for di in range(k) for dj in range(k)]
    patches = jnp.stack(cols, axis=3).reshape(b, oh, ow, k * k * c)
    patches = patches.reshape(b, ph, 2, pw, 2, k * k * c)
    patches = jnp.transpose(patches, (2, 4, 0, 1, 3, 5))       # (2,2,B,ph,pw,K)
    patches = patches.reshape(4, m, k * k * c)
    # Single pad (rows -> mp, K -> kp) emitted with the im2col producer.
    p4 = jnp.pad(patches, ((0, 0), (0, mp - m), (0, kp - k * k * c)))

    y = _conv_relu_pool_call(p4, w_kpn, b_1n, bm)              # (mp, 128)
    return y[:m].reshape(b, ph, pw, LANES)


def prepare_params(params):
    """One-time layout prep: conv weights -> (Kp, 128) bf16 matmul form, fc
    weights zero-padded to 128-wide lanes, fc1 rows permuted from torch (c,h,w)
    flatten order to our (h,w,c) order, biases as (1,128) f32 rows."""
    def conv_w(w_oihw, kp):
        cout, cin, kh, kw = w_oihw.shape
        wm = jnp.transpose(w_oihw, (2, 3, 1, 0)).reshape(kh * kw * cin, cout)
        return _pad_axis(_pad_axis(wm, 0, kp), 1, LANES).astype(jnp.bfloat16)

    def fc_w(w_kn, kp):
        return _pad_axis(_pad_axis(w_kn, 0, kp), 1, LANES).astype(jnp.bfloat16)

    def bias(b_n):
        return _pad_axis(b_n, 0, LANES).reshape(1, LANES).astype(jnp.float32)

    # torch.flatten(x, 1) on NCHW flattens (c, h, w); our kernel flattens (h, w, c).
    r = jnp.arange(16 * 5 * 5)
    h, w, c = r // 80, (r // 16) % 5, r % 16
    perm = c * 25 + h * 5 + w
    fc1_w_hwc = params["fc1_w"][perm, :]

    return {
        "conv1_w": conv_w(params["conv1_w"], 128),
        "conv1_b": bias(params["conv1_b"]),
        "conv2_w": conv_w(params["conv2_w"], 256),
        "conv2_b": bias(params["conv2_b"]),
        "fc1_w": fc_w(fc1_w_hwc, 512),
        "fc1_b": bias(params["fc1_b"]),
        "fc2_w": fc_w(params["fc2_w"], 128),
        "fc2_b": bias(params["fc2_b"]),
        "fc3_w": fc_w(params["fc3_w"], 128),
        "fc3_b": bias(params["fc3_b"]),
    }


def init_params(key):
    """Deterministic parameter init mirroring the nn.Module shapes
    (PyTorch-style uniform(-1/sqrt(fan_in), 1/sqrt(fan_in)))."""
    def uniform(k, shape, fan_in):
        bound = 1.0 / (fan_in ** 0.5)
        return jax.random.uniform(k, shape, jnp.float32, -bound, bound)

    ks = jax.random.split(key, 10)
    return {
        "conv1_w": uniform(ks[0], (6, 3, 5, 5), 3 * 5 * 5),
        "conv1_b": uniform(ks[1], (6,), 3 * 5 * 5),
        "conv2_w": uniform(ks[2], (16, 6, 5, 5), 6 * 5 * 5),
        "conv2_b": uniform(ks[3], (16,), 6 * 5 * 5),
        "fc1_w": uniform(ks[4], (400, 120), 400),
        "fc1_b": uniform(ks[5], (120,), 400),
        "fc2_w": uniform(ks[6], (120, 84), 120),
        "fc2_b": uniform(ks[7], (84,), 120),
        "fc3_w": uniform(ks[8], (84, 10), 84),
        "fc3_b": uniform(ks[9], (10,), 84),
    }


# ----------------------------------------------------------------------------
# Forward pass (3 fused Pallas calls) and pure-JAX f32 reference
# ----------------------------------------------------------------------------
def hyrax_cnn_forward(prepped, x_nchw):
    b = x_nchw.shape[0]
    # Early bf16 cast: all im2col / transpose glue downstream moves bf16 bytes.
    x = jnp.transpose(x_nchw, (0, 2, 3, 1)).astype(jnp.bfloat16)  # NCHW -> NHWC

    # Kernel 1: conv1 + bias + ReLU + pool -> (B, 14, 14, 128), 6 real channels.
    x = conv_relu_pool(x, prepped["conv1_w"], prepped["conv1_b"], 5, 128)
    x = x[..., :6]
    # Kernel 2: conv2 + bias + ReLU + pool -> (B, 5, 5, 128), 16 real channels.
    x = conv_relu_pool(x, prepped["conv2_w"], prepped["conv2_b"], 5, 256)
    # Flatten in (h, w, c) order; fc1 weights were permuted at prep time to match.
    x = x[..., :16].reshape(b, 5 * 5 * 16)

    # Kernel 3: fused fc1/fc2/fc3 -> (B, 128) f32, real logits in cols 0..9.
    logits = mlp3(x, prepped["fc1_w"], prepped["fc1_b"],
                  prepped["fc2_w"], prepped["fc2_b"],
                  prepped["fc3_w"], prepped["fc3_b"])
    return logits[:, :10]


def hyrax_cnn_reference(params, x_nchw):
    """Pure-jnp f32 reference (independent of the Pallas data layout)."""
    b = x_nchw.shape[0]
    x = jnp.transpose(x_nchw, (0, 2, 3, 1))

    def conv_relu(x, w_oihw, bias):
        w = jnp.transpose(w_oihw, (2, 3, 1, 0))                  # HWIO
        y = lax.conv_general_dilated(
            x, w, (1, 1), "VALID",
            dimension_numbers=("NHWC", "HWIO", "NHWC"))
        return jnp.maximum(y + bias, 0.0)

    def pool(x):
        bb, hh, ww, cc = x.shape
        return jnp.max(x.reshape(bb, hh // 2, 2, ww // 2, 2, cc), axis=(2, 4))

    x = pool(conv_relu(x, params["conv1_w"], params["conv1_b"]))
    x = pool(conv_relu(x, params["conv2_w"], params["conv2_b"]))
    x = jnp.transpose(x, (0, 3, 1, 2)).reshape(b, 400)           # torch flatten
    x = jnp.maximum(x @ params["fc1_w"] + params["fc1_b"], 0.0)
    x = jnp.maximum(x @ params["fc2_w"] + params["fc2_b"], 0.0)
    return x @ params["fc3_w"] + params["fc3_b"]


if __name__ == "__main__":
    key = jax.random.PRNGKey(0)
    k_param, k_x = jax.random.split(key)

    params = init_params(k_param)
    prepped = prepare_params(params)                 # one-time layout prep
    # Input: HyraxCNN expects 3x32x32 images (fc1 is 16*5*5 -> 32x32 input).
    x = jax.random.normal(k_x, (2, 3, 32, 32), dtype=jnp.float32)

    fwd = jax.jit(hyrax_cnn_forward)
    out = jax.block_until_ready(fwd(prepped, x))
    ref = jax.block_until_ready(hyrax_cnn_reference(params, x))

    assert out.shape == (2, 10), out.shape
    err = jnp.max(jnp.abs(out - ref))
    # bf16 activations/weights (incl. the early input cast) vs. f32 reference.
    assert jnp.allclose(out, ref, atol=1e-1, rtol=1e-1), f"max abs err {err}"

    print("KERNEL_OK")
</pallas_src>

<mosaic_0001>
module attributes {stable_mosaic.version = 11 : i64} {
  func.func @_conv_relu_pool_kernel(%arg0: i32, %arg1: memref<4x208x128xbf16, #tpu.memory_space<vmem>>, %arg2: memref<128x128xbf16, #tpu.memory_space<vmem>>, %arg3: memref<1x128xf32, #tpu.memory_space<vmem>>, %arg4: memref<208x128xbf16, #tpu.memory_space<vmem>>) attributes {dimension_semantics = [#tpu.dimension_semantics<parallel>], iteration_bounds = array<i64: 2>, scalar_prefetch = 0 : i64, scratch_operands = 0 : i64, tpu.core_type = #tpu.core_type<tc>, window_params = [{transform_indices = @transform_0, window_bounds = array<i64: 4, 208, 128>}, {pipeline_mode = #tpu.pipeline_mode<synchronous>, transform_indices = @transform_1, window_bounds = array<i64: 128, 128>}, {pipeline_mode = #tpu.pipeline_mode<synchronous>, transform_indices = @transform_2, window_bounds = array<i64: 1, 128>}, {transform_indices = @transform_3, window_bounds = array<i64: 208, 128>}]} {
    %c0 = arith.constant 0 : index
    %c0_0 = arith.constant 0 : index
    %c0_1 = arith.constant 0 : index
    %0 = vector.load %arg1[%c0, %c0_0, %c0_1] : memref<4x208x128xbf16, #tpu.memory_space<vmem>>, vector<4x208x128xbf16>
    %1 = vector.shape_cast %0 : vector<4x208x128xbf16> to vector<832x128xbf16>
    %c0_2 = arith.constant 0 : index
    %c0_3 = arith.constant 0 : index
    %2 = vector.load %arg2[%c0_2, %c0_3] : memref<128x128xbf16, #tpu.memory_space<vmem>>, vector<128x128xbf16>
    %cst = arith.constant dense<0.000000e+00> : vector<832x128xf32>
    %3 = tpu.matmul %1, %2, %cst {dimension_numbers = #tpu.dot_dimension_numbers<[1], [0], [0], [1], [0, 0, 1, 1], [], []>} : vector<832x128xbf16>, vector<128x128xbf16>, vector<832x128xf32> -> vector<832x128xf32>
    %4 = vector.shape_cast %3 : vector<832x128xf32> to vector<4x208x128xf32>
    %5 = vector.extract_strided_slice %4 {offsets = [0, 0, 0], sizes = [1, 208, 128], strides = [1, 1, 1]} : vector<4x208x128xf32> to vector<1x208x128xf32>
    %6 = vector.shape_cast %5 : vector<1x208x128xf32> to vector<208x128xf32>
    %7 = vector.extract_strided_slice %4 {offsets = [1, 0, 0], sizes = [1, 208, 128], strides = [1, 1, 1]} : vector<4x208x128xf32> to vector<1x208x128xf32>
    %8 = vector.shape_cast %7 : vector<1x208x128xf32> to vector<208x128xf32>
    %9 = arith.maximumf %6, %8 : vector<208x128xf32>
    %10 = vector.extract_strided_slice %4 {offsets = [2, 0, 0], sizes = [1, 208, 128], strides = [1, 1, 1]} : vector<4x208x128xf32> to vector<1x208x128xf32>
    %11 = vector.shape_cast %10 : vector<1x208x128xf32> to vector<208x128xf32>
    %12 = vector.extract_strided_slice %4 {offsets = [3, 0, 0], sizes = [1, 208, 128], strides = [1, 1, 1]} : vector<4x208x128xf32> to vector<1x208x128xf32>
    %13 = vector.shape_cast %12 : vector<1x208x128xf32> to vector<208x128xf32>
    %14 = arith.maximumf %11, %13 : vector<208x128xf32>
    %15 = arith.maximumf %9, %14 : vector<208x128xf32>
    %c0_4 = arith.constant 0 : index
    %c0_5 = arith.constant 0 : index
    %16 = vector.load %arg3[%c0_4, %c0_5] : memref<1x128xf32, #tpu.memory_space<vmem>>, vector<1x128xf32>
    %17 = vector.broadcast %16 : vector<1x128xf32> to vector<208x128xf32>
    %18 = arith.addf %15, %17 : vector<208x128xf32>
    %cst_6 = arith.constant 0.000000e+00 : f32
    %19 = vector.broadcast %cst_6 : f32 to vector<208x128xf32>
    %20 = arith.maximumf %18, %19 : vector<208x128xf32>
    %21 = arith.truncf %20 : vector<208x128xf32> to vector<208x128xbf16>
    %c0_7 = arith.constant 0 : index
    %c0_8 = arith.constant 0 : index
    %22 = vector.load %arg4[%c0_7, %c0_8] : memref<208x128xbf16, #tpu.memory_space<vmem>>, vector<208x128xbf16>
    tpu.vector_store %arg4[%c0_7, %c0_8], %21 {strides = array<i32>} : memref<208x128xbf16, #tpu.memory_space<vmem>>, vector<208x128xbf16>,
    return
  }
  func.func @transform_0(%arg0: i32) -> (i32, i32, i32) {
    %c0_i32 = arith.constant 0 : i32
    %c0_i32_0 = arith.constant 0 : i32
    %c0_i32_1 = arith.constant 0 : i32
    return %c0_i32, %arg0, %c0_i32_0 : i32, i32, i32
  }
  func.func @transform_1(%arg0: i32) -> (i32, i32) {
    %c0_i32 = arith.constant 0 : i32
    %c0_i32_0 = arith.constant 0 : i32
    %c0_i32_1 = arith.constant 0 : i32
    return %c0_i32, %c0_i32_0 : i32, i32
  }
  func.func @transform_2(%arg0: i32) -> (i32, i32) {
    %c0_i32 = arith.constant 0 : i32
    %c0_i32_0 = arith.constant 0 : i32
    %c0_i32_1 = arith.constant 0 : i32
    return %c0_i32, %c0_i32_0 : i32, i32
  }
  func.func @transform_3(%arg0: i32) -> (i32, i32) {
    %c0_i32 = arith.constant 0 : i32
    %c0_i32_0 = arith.constant 0 : i32
    return %arg0, %c0_i32 : i32, i32
  }
}

module attributes {stable_mosaic.version = 11 : i64} {
  func.func @_conv_relu_pool_kernel(%arg0: i32, %arg1: memref<4x32x256xbf16, #tpu.memory_space<vmem>>, %arg2: memref<256x128xbf16, #tpu.memory_space<vmem>>, %arg3: memref<1x128xf32, #tpu.memory_space<vmem>>, %arg4: memref<32x128xbf16, #tpu.memory_space<vmem>>) attributes {dimension_semantics = [#tpu.dimension_semantics<parallel>], iteration_bounds = array<i64: 2>, scalar_prefetch = 0 : i64, scratch_operands = 0 : i64, tpu.core_type = #tpu.core_type<tc>, window_params = [{transform_indices = @transform_0, window_bounds = array<i64: 4, 32, 256>}, {pipeline_mode = #tpu.pipeline_mode<synchronous>, transform_indices = @transform_1, window_bounds = array<i64: 256, 128>}, {pipeline_mode = #tpu.pipeline_mode<synchronous>, transform_indices = @transform_2, window_bounds = array<i64: 1, 128>}, {transform_indices = @transform_3, window_bounds = array<i64: 32, 128>}]} {
    %c0 = arith.constant 0 : index
    %c0_0 = arith.constant 0 : index
    %c0_1 = arith.constant 0 : index
    %0 = vector.load %arg1[%c0, %c0_0, %c0_1] : memref<4x32x256xbf16, #tpu.memory_space<vmem>>, vector<4x32x256xbf16>
    %1 = vector.shape_cast %0 : vector<4x32x256xbf16> to vector<128x256xbf16>
    %c0_2 = arith.constant 0 : index
    %c0_3 = arith.constant 0 : index
    %2 = vector.load %arg2[%c0_2, %c0_3] : memref<256x128xbf16, #tpu.memory_space<vmem>>, vector<256x128xbf16>
    %cst = arith.constant dense<0.000000e+00> : vector<128x128xf32>
    %3 = tpu.matmul %1, %2, %cst {dimension_numbers = #tpu.dot_dimension_numbers<[1], [0], [0], [1], [0, 0, 1, 1], [], []>} : vector<128x256xbf16>, vector<256x128xbf16>, vector<128x128xf32> -> vector<128x128xf32>
    %4 = vector.shape_cast %3 : vector<128x128xf32> to vector<4x32x128xf32>
    %5 = vector.extract_strided_slice %4 {offsets = [0, 0, 0], sizes = [1, 32, 128], strides = [1, 1, 1]} : vector<4x32x128xf32> to vector<1x32x128xf32>
    %6 = vector.shape_cast %5 : vector<1x32x128xf32> to vector<32x128xf32>
    %7 = vector.extract_strided_slice %4 {offsets = [1, 0, 0], sizes = [1, 32, 128], strides = [1, 1, 1]} : vector<4x32x128xf32> to vector<1x32x128xf32>
    %8 = vector.shape_cast %7 : vector<1x32x128xf32> to vector<32x128xf32>
    %9 = arith.maximumf %6, %8 : vector<32x128xf32>
    %10 = vector.extract_strided_slice %4 {offsets = [2, 0, 0], sizes = [1, 32, 128], strides = [1, 1, 1]} : vector<4x32x128xf32> to vector<1x32x128xf32>
    %11 = vector.shape_cast %10 : vector<1x32x128xf32> to vector<32x128xf32>
    %12 = vector.extract_strided_slice %4 {offsets = [3, 0, 0], sizes = [1, 32, 128], strides = [1, 1, 1]} : vector<4x32x128xf32> to vector<1x32x128xf32>
    %13 = vector.shape_cast %12 : vector<1x32x128xf32> to vector<32x128xf32>
    %14 = arith.maximumf %11, %13 : vector<32x128xf32>
    %15 = arith.maximumf %9, %14 : vector<32x128xf32>
    %c0_4 = arith.constant 0 : index
    %c0_5 = arith.constant 0 : index
    %16 = vector.load %arg3[%c0_4, %c0_5] : memref<1x128xf32, #tpu.memory_space<vmem>>, vector<1x128xf32>
    %17 = vector.broadcast %16 : vector<1x128xf32> to vector<32x128xf32>
    %18 = arith.addf %15, %17 : vector<32x128xf32>
    %cst_6 = arith.constant 0.000000e+00 : f32
    %19 = vector.broadcast %cst_6 : f32 to vector<32x128xf32>
    %20 = arith.maximumf %18, %19 : vector<32x128xf32>
    %21 = arith.truncf %20 : vector<32x128xf32> to vector<32x128xbf16>
    %c0_7 = arith.constant 0 : index
    %c0_8 = arith.constant 0 : index
    %22 = vector.load %arg4[%c0_7, %c0_8] : memref<32x128xbf16, #tpu.memory_space<vmem>>, vector<32x128xbf16>
    tpu.vector_store %arg4[%c0_7, %c0_8], %21 {strides = array<i32>} : memref<32x128xbf16, #tpu.memory_space<vmem>>, vector<32x128xbf16>,
    return
  }
  func.func @transform_0(%arg0: i32) -> (i32, i32, i32) {
    %c0_i32 = arith.constant 0 : i32
    %c0_i32_0 = arith.constant 0 : i32
    %c0_i32_1 = arith.constant 0 : i32
    return %c0_i32, %arg0, %c0_i32_0 : i32, i32, i32
  }
  func.func @transform_1(%arg0: i32) -> (i32, i32) {
    %c0_i32 = arith.constant 0 : i32
    %c0_i32_0 = arith.constant 0 : i32
    %c0_i32_1 = arith.constant 0 : i32
    return %c0_i32, %c0_i32_0 : i32, i32
  }
  func.func @transform_2(%arg0: i32) -> (i32, i32) {
    %c0_i32 = arith.constant 0 : i32
    %c0_i32_0 = arith.constant 0 : i32
    %c0_i32_1 = arith.constant 0 : i32
    return %c0_i32, %c0_i32_0 : i32, i32
  }
  func.func @transform_3(%arg0: i32) -> (i32, i32) {
    %c0_i32 = arith.constant 0 : i32
    %c0_i32_0 = arith.constant 0 : i32
    return %arg0, %c0_i32 : i32, i32
  }
}

module attributes {stable_mosaic.version = 11 : i64} {
  func.func @_mlp3_kernel(%arg0: i32, %arg1: memref<16x512xbf16, #tpu.memory_space<vmem>>, %arg2: memref<512x128xbf16, #tpu.memory_space<vmem>>, %arg3: memref<1x128xf32, #tpu.memory_space<vmem>>, %arg4: memref<128x128xbf16, #tpu.memory_space<vmem>>, %arg5: memref<1x128xf32, #tpu.memory_space<vmem>>, %arg6: memref<128x128xbf16, #tpu.memory_space<vmem>>, %arg7: memref<1x128xf32, #tpu.memory_space<vmem>>, %arg8: memref<16x128xf32, #tpu.memory_space<vmem>>) attributes {dimension_semantics = [#tpu.dimension_semantics<parallel>], iteration_bounds = array<i64: 1>, scalar_prefetch = 0 : i64, scratch_operands = 0 : i64, tpu.core_type = #tpu.core_type<tc>, window_params = [{transform_indices = @transform_0, window_bounds = array<i64: 16, 512>}, {pipeline_mode = #tpu.pipeline_mode<synchronous>, transform_indices = @transform_1, window_bounds = array<i64: 512, 128>}, {pipeline_mode = #tpu.pipeline_mode<synchronous>, transform_indices = @transform_2, window_bounds = array<i64: 1, 128>}, {pipeline_mode = #tpu.pipeline_mode<synchronous>, transform_indices = @transform_3, window_bounds = array<i64: 128, 128>}, {pipeline_mode = #tpu.pipeline_mode<synchronous>, transform_indices = @transform_4, window_bounds = array<i64: 1, 128>}, {pipeline_mode = #tpu.pipeline_mode<synchronous>, transform_indices = @transform_5, window_bounds = array<i64: 128, 128>}, {pipeline_mode = #tpu.pipeline_mode<synchronous>, transform_indices = @transform_6, window_bounds = array<i64: 1, 128>}, {transform_indices = @transform_7, window_bounds = array<i64: 16, 128>}]} {
    %c0 = arith.constant 0 : index
    %c0_0 = arith.constant 0 : index
    %0 = vector.load %arg1[%c0, %c0_0] : memref<16x512xbf16, #tpu.memory_space<vmem>>, vector<16x512xbf16>
    %c0_1 = arith.constant 0 : index
    %c0_2 = arith.constant 0 : index
    %1 = vector.load %arg2[%c0_1, %c0_2] : memref<512x128xbf16, #tpu.memory_space<vmem>>, vector<512x128xbf16>
    %cst = arith.constant dense<0.000000e+00> : vector<16x128xf32>
    %2 = tpu.matmul %0, %1, %cst {dimension_numbers = #tpu.dot_dimension_numbers<[1], [0], [0], [1], [0, 0, 1, 1], [], []>} : vector<16x512xbf16>, vector<512x128xbf16>, vector<16x128xf32> -> vector<16x128xf32>
    %c0_3 = arith.constant 0 : index
    %c0_4 = arith.constant 0 : index
    %3 = vector.load %arg3[%c0_3, %c0_4] : memref<1x128xf32, #tpu.memory_space<vmem>>, vector<1x128xf32>
    %4 = vector.broadcast %3 : vector<1x128xf32> to vector<16x128xf32>
    %5 = arith.addf %2, %4 : vector<16x128xf32>
    %cst_5 = arith.constant 0.000000e+00 : f32
    %6 = vector.broadcast %cst_5 : f32 to vector<16x128xf32>
    %7 = arith.maximumf %5, %6 : vector<16x128xf32>
    %8 = arith.truncf %7 : vector<16x128xf32> to vector<16x128xbf16>
    %c0_6 = arith.constant 0 : index
    %c0_7 = arith.constant 0 : index
    %9 = vector.load %arg4[%c0_6, %c0_7] : memref<128x128xbf16, #tpu.memory_space<vmem>>, vector<128x128xbf16>
    %cst_8 = arith.constant dense<0.000000e+00> : vector<16x128xf32>
    %10 = tpu.matmul %8, %9, %cst_8 {dimension_numbers = #tpu.dot_dimension_numbers<[1], [0], [0], [1], [0, 0, 1, 1], [], []>} : vector<16x128xbf16>, vector<128x128xbf16>, vector<16x128xf32> -> vector<16x128xf32>
    %c0_9 = arith.constant 0 : index
    %c0_10 = arith.constant 0 : index
    %11 = vector.load %arg5[%c0_9, %c0_10] : memref<1x128xf32, #tpu.memory_space<vmem>>, vector<1x128xf32>
    %12 = vector.broadcast %11 : vector<1x128xf32> to vector<16x128xf32>
    %13 = arith.addf %10, %12 : vector<16x128xf32>
    %cst_11 = arith.constant 0.000000e+00 : f32
    %14 = vector.broadcast %cst_11 : f32 to vector<16x128xf32>
    %15 = arith.maximumf %13, %14 : vector<16x128xf32>
    %16 = arith.truncf %15 : vector<16x128xf32> to vector<16x128xbf16>
    %c0_12 = arith.constant 0 : index
    %c0_13 = arith.constant 0 : index
    %17 = vector.load %arg6[%c0_12, %c0_13] : memref<128x128xbf16, #tpu.memory_space<vmem>>, vector<128x128xbf16>
    %cst_14 = arith.constant dense<0.000000e+00> : vector<16x128xf32>
    %18 = tpu.matmul %16, %17, %cst_14 {dimension_numbers = #tpu.dot_dimension_numbers<[1], [0], [0], [1], [0, 0, 1, 1], [], []>} : vector<16x128xbf16>, vector<128x128xbf16>, vector<16x128xf32> -> vector<16x128xf32>
    %c0_15 = arith.constant 0 : index
    %c0_16 = arith.constant 0 : index
    %19 = vector.load %arg7[%c0_15, %c0_16] : memref<1x128xf32, #tpu.memory_space<vmem>>, vector<1x128xf32>
    %20 = vector.broadcast %19 : vector<1x128xf32> to vector<16x128xf32>
    %21 = arith.addf %18, %20 : vector<16x128xf32>
    %c0_17 = arith.constant 0 : index
    %c0_18 = arith.constant 0 : index
    %22 = vector.load %arg8[%c0_17, %c0_18] : memref<16x128xf32, #tpu.memory_space<vmem>>, vector<16x128xf32>
    tpu.vector_store %arg8[%c0_17, %c0_18], %21 {strides = array<i32>} : memref<16x128xf32, #tpu.memory_space<vmem>>, vector<16x128xf32>,
    return
  }
  func.func @transform_0(%arg0: i32) -> (i32, i32) {
    %c0_i32 = arith.constant 0 : i32
    %c0_i32_0 = arith.constant 0 : i32
    return %arg0, %c0_i32 : i32, i32
  }
  func.func @transform_1(%arg0: i32) -> (i32, i32) {
    %c0_i32 = arith.constant 0 : i32
    %c0_i32_0 = arith.constant 0 : i32
    %c0_i32_1 = arith.constant 0 : i32
    return %c0_i32, %c0_i32_0 : i32, i32
  }
  func.func @transform_2(%arg0: i32) -> (i32, i32) {
    %c0_i32 = arith.constant 0 : i32
    %c0_i32_0 = arith.constant 0 : i32
    %c0_i32_1 = arith.constant 0 : i32
    return %c0_i32, %c0_i32_0 : i32, i32
  }
  func.func @transform_3(%arg0: i32) -> (i32, i32) {
    %c0_i32 = arith.constant 0 : i32
    %c0_i32_0 = arith.constant 0 : i32
    %c0_i32_1 = arith.constant 0 : i32
    return %c0_i32, %c0_i32_0 : i32, i32
  }
  func.func @transform_4(%arg0: i32) -> (i32, i32) {
    %c0_i32 = arith.constant 0 : i32
    %c0_i32_0 = arith.constant 0 : i32
    %c0_i32_1 = arith.constant 0 : i32
    return %c0_i32, %c0_i32_0 : i32, i32
  }
  func.func @transform_5(%arg0: i32) -> (i32, i32) {
    %c0_i32 = arith.constant 0 : i32
    %c0_i32_0 = arith.constant 0 : i32
    %c0_i32_1 = arith.constant 0 : i32
    return %c0_i32, %c0_i32_0 : i32, i32
  }
  func.func @transform_6(%arg0: i32) -> (i32, i32) {
    %c0_i32 = arith.constant 0 : i32
    %c0_i32_0 = arith.constant 0 : i32
    %c0_i32_1 = arith.constant 0 : i32
    return %c0_i32, %c0_i32_0 : i32, i32
  }
  func.func @transform_7(%arg0: i32) -> (i32, i32) {
    %c0_i32 = arith.constant 0 : i32
    %c0_i32_0 = arith.constant 0 : i32
    return %arg0, %c0_i32 : i32, i32
  }
}

</mosaic_0001>

<bundles_post_ra>
// kernel: hyrax_cnn_forward.3
= control target key start
LH: loop header
LB: loop body
LE: loop exit
PB: predicated region body
PF: predicated region fallthrough
CT: control target
= control target key end

     0   :  { %s2108_s12 = smov 0   ;;  %s2110_s13 = smov 0   ;;  %s2392_s0 = inlined_call_operand.vmem [shape: bf16[4,416,128], index: 0, kind: input, shape index: {}]   ;;  %s2393_s1 = inlined_call_operand.vmem [shape: bf16[128,128], index: 1, kind: input, shape index: {}]   ;;  %s2394_s2 = inlined_call_operand.vmem [shape: f32[1,128], index: 2, kind: input, shape index: {}]   ;;  %s2395_s3 = inlined_call_operand.vmem [shape: bf16[416,128], index: 3, kind: output, shape index: {}]  }
   0x1   :  { %s2112_s14 = smov 0  }
   0x2 LB: > { %s1626_s15 = sadd.s32 4294967295, %s2086_s14   ;;  %s2125_s16 = sadd.s32 1, %s2086_s14   ;;  %s2086_s14 = sphi %s2112_s14, %s2398_s14   ;;  %s2082_s13 = sphi %s2110_s13, %s2397_s13   ;;  %s2078_s12 = sphi %s2108_s12, %s2396_s12  }
   0x3   : > { %s17_s17 = ssub.s32 %s2086_s14, %s2125_s16  ;;  %s20_s18 = sadd.s32 1, %s2082_s13 }
   0x4   : > { %p18_p0 = scmp.eq.s32.totalorder %s17_s17, 0  ;;  %p27_p1 = scmp.ne.s32.totalorder %s2082_s13, %s2078_s12 }
   0x5   : > { %p28_p2 = scmp.eq.s32.totalorder %s2086_s14, 0  ;;  %p1629_p4 = scmp.ge.s32.totalorder %s2086_s14, 2 }
   0x6   : > { %s2134_s19 = scalar_select %p18_p0, %s2082_s13, %s20_s18  }
   0x7   : > { %p29_p3 = por %p28_p2, %p27_p1  ;;  %127 = sbr.rel (%p1629_p4) target bundleno = 69 (0x45), region = 24 }
   0xc   : > { %130 = sbr.rel (!%p29_p3) target bundleno = 69 (0x45), region = 28  ;;  %s132_s20 = sand.u32 (%p29_p3), 1, %s2082_s13  }
   0xd   : > { %s1875_s21 = smul.u32 (%p29_p3), 104, %s2086_s14 }
   0xe   : > { %s2037_s22 = smul.u32 (%p29_p3), 416, %s132_s20 }
   0xf   : > { %s2142_s25 = scalar_lea.vmem (%p29_p3), %s2392_s0, %s1875_s21 }
  0x10   : > { %v154_v0 = vld [vmem:[%s2142_s25] sm:$0xff] (%p29_p3)   ;;  %v158_v1 = vld [vmem:[%s2142_s25 + $0x8] sm:$0xff] (%p29_p3)   ;;  %v162_v2 = vld [vmem:[%s2142_s25 + $0x10] sm:$0xff] (%p29_p3)   ;;  %s2147_s26 = scalar_lea.vmem (%p29_p3), [#allocation2], %s2037_s22 }
  0x11   : > { %155 = vst [vmem:[%s2147_s26] sm:$0xff] %v154_v0   ;;  %v166_v3 = vld [vmem:[%s2142_s25 + $0x18] sm:$0xff]   ;;  %v170_v4 = vld [vmem:[%s2142_s25 + $0x20] sm:$0xff]   ;;  %v174_v5 = vld [vmem:[%s2142_s25 + $0x28] sm:$0xff]  }
  0x12   : > { %159 = vst [vmem:[%s2147_s26 + $0x8] sm:$0xff] %v158_v1   ;;  %v178_v6 = vld [vmem:[%s2142_s25 + $0x30] sm:$0xff]   ;;  %v182_v7 = vld [vmem:[%s2142_s25 + $0x38] sm:$0xff]   ;;  %v186_v8 = vld [vmem:[%s2142_s25 + $0x40] sm:$0xff]  }
  0x13   : > { %163 = vst [vmem:[%s2147_s26 + $0x10] sm:$0xff] %v162_v2   ;;  %v190_v9 = vld [vmem:[%s2142_s25 + $0x48] sm:$0xff]   ;;  %v194_v10 = vld [vmem:[%s2142_s25 + $0x50] sm:$0xff]   ;;  %v198_v11 = vld [vmem:[%s2142_s25 + $0x58] sm:$0xff]  }
  0x14   : > { %167 = vst [vmem:[%s2147_s26 + $0x18] sm:$0xff] %v166_v3   ;;  %v202_v12 = vld [vmem:[%s2142_s25 + $0x60] sm:$0xff]   ;;  %v206_v13 = vld [vmem:[%s2142_s25 + $0xd0] sm:$0xff]   ;;  %v210_v14 = vld [vmem:[%s2142_s25 + $0xd8] sm:$0xff]  }
  0x15   : > { %171 = vst [vmem:[%s2147_s26 + $0x20] sm:$0xff] %v170_v4   ;;  %v214_v15 = vld [vmem:[%s2142_s25 + $0xe0] sm:$0xff]   ;;  %v218_v16 = vld [vmem:[%s2142_s25 + $0xe8] sm:$0xff]   ;;  %v222_v17 = vld [vmem:[%s2142_s25 + $0xf0] sm:$0xff]  }
  0x16   : > { %175 = vst [vmem:[%s2147_s26 + $0x28] sm:$0xff] %v174_v5   ;;  %v226_v18 = vld [vmem:[%s2142_s25 + $0xf8] sm:$0xff]   ;;  %v230_v19 = vld [vmem:[%s2142_s25 + $0x100] sm:$0xff]   ;;  %v234_v20 = vld [vmem:[%s2142_s25 + $0x108] sm:$0xff]  }
  0x17   : > { %179 = vst [vmem:[%s2147_s26 + $0x30] sm:$0xff] %v178_v6   ;;  %v238_v21 = vld [vmem:[%s2142_s25 + $0x110] sm:$0xff]   ;;  %v242_v22 = vld [vmem:[%s2142_s25 + $0x118] sm:$0xff]   ;;  %v246_v23 = vld [vmem:[%s2142_s25 + $0x120] sm:$0xff]  }
  0x18   : > { %183 = vst [vmem:[%s2147_s26 + $0x38] sm:$0xff] %v182_v7   ;;  %v250_v24 = vld [vmem:[%s2142_s25 + $0x128] sm:$0xff]   ;;  %v254_v25 = vld [vmem:[%s2142_s25 + $0x130] sm:$0xff]   ;;  %v258_v26 = vld [vmem:[%s2142_s25 + $0x1a0] sm:$0xff]  }
  0x19   : > { %187 = vst [vmem:[%s2147_s26 + $0x40] sm:$0xff] %v186_v8   ;;  %v262_v27 = vld [vmem:[%s2142_s25 + $0x1a8] sm:$0xff]   ;;  %v266_v28 = vld [vmem:[%s2142_s25 + $0x1b0] sm:$0xff]   ;;  %v270_v29 = vld [vmem:[%s2142_s25 + $0x1b8] sm:$0xff]  }
  0x1a   : > { %191 = vst [vmem:[%s2147_s26 + $0x48] sm:$0xff] %v190_v9   ;;  %v274_v30 = vld [vmem:[%s2142_s25 + $0x1c0] sm:$0xff]   ;;  %v278_v31 = vld [vmem:[%s2142_s25 + $0x1c8] sm:$0xff]   ;;  %v282_v32 = vld [vmem:[%s2142_s25 + $0x1d0] sm:$0xff]  }
  0x1b   : > { %195 = vst [vmem:[%s2147_s26 + $0x50] sm:$0xff] %v194_v10   ;;  %v286_v33 = vld [vmem:[%s2142_s25 + $0x1d8] sm:$0xff]   ;;  %v290_v34 = vld [vmem:[%s2142_s25 + $0x1e0] sm:$0xff]   ;;  %v294_v35 = vld [vmem:[%s2142_s25 + $0x1e8] sm:$0xff]  }
  0x1c   : > { %199 = vst [vmem:[%s2147_s26 + $0x58] sm:$0xff] %v198_v11   ;;  %v298_v36 = vld [vmem:[%s2142_s25 + $0x1f0] sm:$0xff]   ;;  %v302_v37 = vld [vmem:[%s2142_s25 + $0x1f8] sm:$0xff]   ;;  %v306_v38 = vld [vmem:[%s2142_s25 + $0x200] sm:$0xff]  }
  0x1d   : > { %203 = vst [vmem:[%s2147_s26 + $0x60] sm:$0xff] %v202_v12   ;;  %v310_v39 = vld [vmem:[%s2142_s25 + $0x270] sm:$0xff]   ;;  %v314_v40 = vld [vmem:[%s2142_s25 + $0x278] sm:$0xff]   ;;  %v318_v41 = vld [vmem:[%s2142_s25 + $0x280] sm:$0xff]  }
  0x1e   : > { %207 = vst [vmem:[%s2147_s26 + $0x68] sm:$0xff] %v206_v13   ;;  %v322_v42 = vld [vmem:[%s2142_s25 + $0x288] sm:$0xff]   ;;  %v326_v43 = vld [vmem:[%s2142_s25 + $0x290] sm:$0xff]   ;;  %v330_v44 = vld [vmem:[%s2142_s25 + $0x298] sm:$0xff]  }
  0x1f   : > { %211 = vst [vmem:[%s2147_s26 + $0x70] sm:$0xff] %v210_v14   ;;  %v334_v45 = vld [vmem:[%s2142_s25 + $0x2a0] sm:$0xff]   ;;  %v338_v46 = vld [vmem:[%s2142_s25 + $0x2a8] sm:$0xff]   ;;  %v342_v47 = vld [vmem:[%s2142_s25 + $0x2b0] sm:$0xff]  }
  0x20   : > { %215 = vst [vmem:[%s2147_s26 + $0x78] sm:$0xff] %v214_v15   ;;  %v346_v48 = vld [vmem:[%s2142_s25 + $0x2b8] sm:$0xff]   ;;  %v350_v49 = vld [vmem:[%s2142_s25 + $0x2c0] sm:$0xff]   ;;  %v354_v50 = vld [vmem:[%s2142_s25 + $0x2c8] sm:$0xff]  }
  0x21   : > { %219 = vst [vmem:[%s2147_s26 + $0x80] sm:$0xff] %v218_v16   ;;  %v358_v51 = vld [vmem:[%s2142_s25 + $0x2d0] sm:$0xff]  }
  0x22   : > { %223 = vst [vmem:[%s2147_s26 + $0x88] sm:$0xff] %v222_v17  }
  0x23   : > { %227 = vst [vmem:[%s2147_s26 + $0x90] sm:$0xff] %v226_v18  }
  0x24   : > { %231 = vst [vmem:[%s2147_s26 + $0x98] sm:$0xff] %v230_v19  }
  0x25   : > { %235 = vst [vmem:[%s2147_s26 + $0xa0] sm:$0xff] %v234_v20  }
  0x26   : > { %239 = vst [vmem:[%s2147_s26 + $0xa8] sm:$0xff] %v238_v21  }
  0x27   : > { %243 = vst [vmem:[%s2147_s26 + $0xb0] sm:$0xff] %v242_v22  }
  0x28   : > { %247 = vst [vmem:[%s2147_s26 + $0xb8] sm:$0xff] %v246_v23  }
  0x29   : > { %251 = vst [vmem:[%s2147_s26 + $0xc0] sm:$0xff] %v250_v24  }
  0x2a   : > { %255 = vst [vmem:[%s2147_s26 + $0xc8] sm:$0xff] %v254_v25  }
  0x2b   : > { %259 = vst [vmem:[%s2147_s26 + $0xd0] sm:$0xff] %v258_v26  }
  0x2c   : > { %263 = vst [vmem:[%s2147_s26 + $0xd8] sm:$0xff] %v262_v27  }
  0x2d   : > { %267 = vst [vmem:[%s2147_s26 + $0xe0] sm:$0xff] %v266_v28  }
  0x2e   : > { %271 = vst [vmem:[%s2147_s26 + $0xe8] sm:$0xff] %v270_v29  }
  0x2f   : > { %275 = vst [vmem:[%s2147_s26 + $0xf0] sm:$0xff] %v274_v30  }
  0x30   : > { %279 = vst [vmem:[%s2147_s26 + $0xf8] sm:$0xff] %v278_v31  }
  0x31   : > { %283 = vst [vmem:[%s2147_s26 + $0x100] sm:$0xff] %v282_v32  }
  0x32   : > { %287 = vst [vmem:[%s2147_s26 + $0x108] sm:$0xff] %v286_v33  }
  0x33   : > { %291 = vst [vmem:[%s2147_s26 + $0x110] sm:$0xff] %v290_v34  }
  0x34   : > { %295 = vst [vmem:[%s2147_s26 + $0x118] sm:$0xff] %v294_v35  }
  0x35   : > { %299 = vst [vmem:[%s2147_s26 + $0x120] sm:$0xff] %v298_v36  }
  0x36   : > { %303 = vst [vmem:[%s2147_s26 + $0x128] sm:$0xff] %v302_v37  }
  0x37   : > { %307 = vst [vmem:[%s2147_s26 + $0x130] sm:$0xff] %v306_v38  }
  0x38   : > { %311 = vst [vmem:[%s2147_s26 + $0x138] sm:$0xff] %v310_v39  }
  0x39   : > { %315 = vst [vmem:[%s2147_s26 + $0x140] sm:$0xff] %v314_v40  }
  0x3a   : > { %319 = vst [vmem:[%s2147_s26 + $0x148] sm:$0xff] %v318_v41  }
  0x3b   : > { %323 = vst [vmem:[%s2147_s26 + $0x150] sm:$0xff] %v322_v42  }
  0x3c   : > { %327 = vst [vmem:[%s2147_s26 + $0x158] sm:$0xff] %v326_v43  }
  0x3d   : > { %331 = vst [vmem:[%s2147_s26 + $0x160] sm:$0xff] %v330_v44  }
  0x3e   : > { %335 = vst [vmem:[%s2147_s26 + $0x168] sm:$0xff] %v334_v45  }
  0x3f   : > { %339 = vst [vmem:[%s2147_s26 + $0x170] sm:$0xff] %v338_v46  }
  0x40   : > { %343 = vst [vmem:[%s2147_s26 + $0x178] sm:$0xff] %v342_v47  }
  0x41   : > { %347 = vst [vmem:[%s2147_s26 + $0x180] sm:$0xff] %v346_v48  }
  0x42   : > { %351 = vst [vmem:[%s2147_s26 + $0x188] sm:$0xff] %v350_v49  }
  0x43   : > { %355 = vst [vmem:[%s2147_s26 + $0x190] sm:$0xff] %v354_v50  }
  0x44   : > { %359 = vst [vmem:[%s2147_s26 + $0x198] sm:$0xff] %v358_v51  }
  0x45 PF: > { %p1631_p5 = scmp.ge.s32.totalorder %s2086_s14, 1  ;;  %p592_p6 = scmp.lt.s32.totalorder %s2086_s14, 3 }
  0x47   : > { %p593_p7 = pnand %p1631_p5, %p592_p6 }
  0x48   : > { %s599_s17 = sand.u32 (!%p593_p7), 1, %s2078_s12   ;;  %s623_s12 = smul.u32 (!%p593_p7), 26, %s1626_s15 }
  0x49   : > { %596 = sbr.rel (%p593_p7) target bundleno = 454 (0x1c6), region = 69 }
  0x4a   : > { %s2038_s21 = smul.u32 (!%p593_p7), 416, %s599_s17  ;;  %p624_p8 = scmp.lt.s32.totalorder (!%p593_p7), %s623_s12, 51 }
  0x4c   : > { %s2277_s24 = scalar_lea.vmem (!%p593_p7), [#allocation2], %s2038_s21 }
  0x4e   : > { %v1935_v52 = vld [vmem:[%s2393_s1 + $0x38] sm:$0xff]  ;;  %v1934_v53 = vld [vmem:[%s2393_s1 + $0x30] sm:$0xff]  ;;  %v1933_v54 = vld [vmem:[%s2393_s1 + $0x28] sm:$0xff]  ;;  %s2400_s12 = smov (!%p624_p8, %s623_s12), 51 }
  0x4f   : > { %1109 = vmatpush.bf16.msra.mxu0 %v1935_v52  ;;  %2013 = vmatpush.bf16.msra.mxu1 %v1935_v52  ;;  %v1932_v55 = vld [vmem:[%s2393_s1 + $0x20] sm:$0xff]  ;;  %v1931_v56 = vld [vmem:[%s2393_s1 + $0x18] sm:$0xff]  ;;  %v1930_v57 = vld [vmem:[%s2393_s1 + $0x10] sm:$0xff]  ;;  %s1632_s14 = sshll.u32 %s2400_s12, 2 }
  0x50   : > { %2014 = vmatpush.bf16.msra.mxu2 %v1935_v52  ;;  %2015 = vmatpush.bf16.msra.mxu3 %v1935_v52  ;;  %v1929_v58 = vld [vmem:[%s2393_s1 + $0x8] sm:$0xff]  ;;  %v1928_v59 = vld [vmem:[%s2393_s1] sm:$0xff]  ;;  %v1902_v62 = vld [vmem:[%s2277_s24 + $0xd0] sm:$0xff]  ;;  %s2331_s28 = scalar_lea.vmem %s2395_s3, %s1632_s14 }
  0x51   : > { %v1876_v60 = vld [vmem:[%s2277_s24] sm:$0xff]  ;;  %v1889_v61 = vld [vmem:[%s2277_s24 + $0x68] sm:$0xff]  ;;  %v1915_v63 = vld [vmem:[%s2277_s24 + $0x138] sm:$0xff] }
  0x52   : > { %v1877_v0 = vld [vmem:[%s2277_s24 + $0x8] sm:$0xff]  ;;  %v1890_v1 = vld [vmem:[%s2277_s24 + $0x70] sm:$0xff]  ;;  %v1903_v2 = vld [vmem:[%s2277_s24 + $0xd8] sm:$0xff] }
  0x53   : > { %1110 = vmatpush.bf16.msra.mxu0 %v1934_v53  ;;  %2016 = vmatpush.bf16.msra.mxu1 %v1934_v53  ;;  %v1916_v3 = vld [vmem:[%s2277_s24 + $0x140] sm:$0xff]  ;;  %v1878_v4 = vld [vmem:[%s2277_s24 + $0x10] sm:$0xff]  ;;  %v1891_v5 = vld [vmem:[%s2277_s24 + $0x78] sm:$0xff] }
  0x54   : > { %2017 = vmatpush.bf16.msra.mxu2 %v1934_v53  ;;  %2018 = vmatpush.bf16.msra.mxu3 %v1934_v53  ;;  %v1904_v6 = vld [vmem:[%s2277_s24 + $0xe0] sm:$0xff]  ;;  %v1917_v7 = vld [vmem:[%s2277_s24 + $0x148] sm:$0xff]  ;;  %v1879_v8 = vld [vmem:[%s2277_s24 + $0x18] sm:$0xff] }
  0x55   : > { %v1892_v9 = vld [vmem:[%s2277_s24 + $0x80] sm:$0xff]  ;;  %v1905_v10 = vld [vmem:[%s2277_s24 + $0xe8] sm:$0xff]  ;;  %v1918_v11 = vld [vmem:[%s2277_s24 + $0x150] sm:$0xff] }
  0x56   : > { %v1880_v12 = vld [vmem:[%s2277_s24 + $0x20] sm:$0xff]  ;;  %v1893_v13 = vld [vmem:[%s2277_s24 + $0x88] sm:$0xff]  ;;  %v1906_v14 = vld [vmem:[%s2277_s24 + $0xf0] sm:$0xff] }
  0x57   : > { %1111 = vmatpush.bf16.msra.mxu0 %v1933_v54  ;;  %2019 = vmatpush.bf16.msra.mxu1 %v1933_v54  ;;  %v1919_v15 = vld [vmem:[%s2277_s24 + $0x158] sm:$0xff]  ;;  %v1881_v16 = vld [vmem:[%s2277_s24 + $0x28] sm:$0xff]  ;;  %v1894_v17 = vld [vmem:[%s2277_s24 + $0x90] sm:$0xff] }
  0x58   : > { %2020 = vmatpush.bf16.msra.mxu2 %v1933_v54  ;;  %2021 = vmatpush.bf16.msra.mxu3 %v1933_v54  ;;  %v1907_v18 = vld [vmem:[%s2277_s24 + $0xf8] sm:$0xff]  ;;  %v1920_v19 = vld [vmem:[%s2277_s24 + $0x160] sm:$0xff]  ;;  %v1882_v20 = vld [vmem:[%s2277_s24 + $0x30] sm:$0xff] }
  0x59   : > { %v1895_v21 = vld [vmem:[%s2277_s24 + $0x98] sm:$0xff]  ;;  %v1908_v22 = vld [vmem:[%s2277_s24 + $0x100] sm:$0xff]  ;;  %v1921_v23 = vld [vmem:[%s2277_s24 + $0x168] sm:$0xff] }
  0x5a   : > { %v1883_v24 = vld [vmem:[%s2277_s24 + $0x38] sm:$0xff]  ;;  %v1896_v25 = vld [vmem:[%s2277_s24 + $0xa0] sm:$0xff]  ;;  %v1909_v26 = vld [vmem:[%s2277_s24 + $0x108] sm:$0xff] }
  0x5b   : > { %1112 = vmatpush.bf16.msra.mxu0 %v1932_v55  ;;  %2022 = vmatpush.bf16.msra.mxu1 %v1932_v55  ;;  %v1922_v27 = vld [vmem:[%s2277_s24 + $0x170] sm:$0xff]  ;;  %v1884_v28 = vld [vmem:[%s2277_s24 + $0x40] sm:$0xff]  ;;  %v1897_v29 = vld [vmem:[%s2277_s24 + $0xa8] sm:$0xff] }
  0x5c   : > { %2023 = vmatpush.bf16.msra.mxu2 %v1932_v55  ;;  %2024 = vmatpush.bf16.msra.mxu3 %v1932_v55  ;;  %v1910_v32 = vld [vmem:[%s2277_s24 + $0x110] sm:$0xff]  ;;  %v1923_v33 = vld [vmem:[%s2277_s24 + $0x178] sm:$0xff]  ;;  %v2320_v41 = vld [vmem:[%s2394_s2] ss:$0 sm:$0xff] }
  0x5d   : > { %v1885_v44 = vld [vmem:[%s2277_s24 + $0x48] sm:$0xff]  ;;  %v1898_v45 = vld [vmem:[%s2277_s24 + $0xb0] sm:$0xff]  ;;  %v1911_v50 = vld [vmem:[%s2277_s24 + $0x118] sm:$0xff] }
  0x5e   : > { %v1924_v51 = vld [vmem:[%s2277_s24 + $0x180] sm:$0xff] }
  0x5f   : > { %1113 = vmatpush.bf16.msra.mxu0 %v1931_v56  ;;  %2025 = vmatpush.bf16.msra.mxu1 %v1931_v56 }
  0x60   : > { %2026 = vmatpush.bf16.msra.mxu2 %v1931_v56  ;;  %2027 = vmatpush.bf16.msra.mxu3 %v1931_v56 }
  0x63   : > { %1114 = vmatpush.bf16.msra.mxu0 %v1930_v57  ;;  %2028 = vmatpush.bf16.msra.mxu1 %v1930_v57 }
  0x64   : > { %2029 = vmatpush.bf16.msra.mxu2 %v1930_v57  ;;  %2030 = vmatpush.bf16.msra.mxu3 %v1930_v57 }
  0x67   : > { %1115 = vmatpush.bf16.msra.mxu0 %v1929_v58  ;;  %2031 = vmatpush.bf16.msra.mxu1 %v1929_v58 }
  0x68   : > { %2032 = vmatpush.bf16.msra.mxu2 %v1929_v58  ;;  %2033 = vmatpush.bf16.msra.mxu3 %v1929_v58 }
  0x6b   : > { %1116 = vmatpush.bf16.msra.mxu0 %v1928_v59  ;;  %2034 = vmatpush.bf16.msra.mxu1 %v1928_v59 }
  0x6c   : > { %2035 = vmatpush.bf16.msra.mxu2 %v1928_v59  ;;  %2036 = vmatpush.bf16.msra.mxu3 %v1928_v59 }
  0x6e   : > { %1117 = vmatmul.bf16.vlgmr.msra.gmra.mxu0 %v1876_v60  ;;  %1182 = vmatmul.bf16.vlgmr.msra.gmra.mxu1 %v1889_v61 }
  0x6f   : > { %1247 = vmatmul.bf16.vlgmr.msra.gmra.mxu2 %v1902_v62  ;;  %1312 = vmatmul.bf16.vlgmr.msra.gmra.mxu3 %v1915_v63 }
  0x7e   : > { %1122 = vmatmul.bf16.gmra.mxu0 %v1877_v0  ;;  %1187 = vmatmul.bf16.gmra.mxu1 %v1890_v1 }
  0x7f   : > { %1252 = vmatmul.bf16.gmra.mxu2 %v1903_v2  ;;  %1317 = vmatmul.bf16.gmra.mxu3 %v1916_v3  ;;  %v1886_v3 = vld [vmem:[%s2277_s24 + $0x50] sm:$0xff] }
  0x8e   : > { %1127 = vmatmul.bf16.gmra.mxu0 %v1878_v4  ;;  %1192 = vmatmul.bf16.gmra.mxu1 %v1891_v5  ;;  %v1899_v4 = vld [vmem:[%s2277_s24 + $0xb8] sm:$0xff] }
  0x8f   : > { %1257 = vmatmul.bf16.gmra.mxu2 %v1904_v6  ;;  %1322 = vmatmul.bf16.gmra.mxu3 %v1917_v7 }
  0x9e   : > { %1132 = vmatmul.bf16.gmra.mxu0 %v1879_v8  ;;  %1197 = vmatmul.bf16.gmra.mxu1 %v1892_v9  ;;  %v1912_v9 = vld [vmem:[%s2277_s24 + $0x120] sm:$0xff] }
  0x9f   : > { %1262 = vmatmul.bf16.gmra.mxu2 %v1905_v10  ;;  %1327 = vmatmul.bf16.gmra.mxu3 %v1918_v11  ;;  %v1925_v10 = vld [vmem:[%s2277_s24 + $0x188] sm:$0xff] }
  0xae   : > { %1137 = vmatmul.bf16.gmra.mxu0 %v1880_v12  ;;  %1202 = vmatmul.bf16.gmra.mxu1 %v1893_v13 }
  0xaf   : > { %1267 = vmatmul.bf16.gmra.mxu2 %v1906_v14  ;;  %1332 = vmatmul.bf16.gmra.mxu3 %v1919_v15 }
  0xbe   : > { %1142 = vmatmul.bf16.gmra.mxu0 %v1881_v16  ;;  %1207 = vmatmul.bf16.gmra.mxu1 %v1894_v17 }
  0xbf   : > { %1272 = vmatmul.bf16.gmra.mxu2 %v1907_v18  ;;  %1337 = vmatmul.bf16.gmra.mxu3 %v1920_v19 }
  0xce   : > { %1147 = vmatmul.bf16.gmra.mxu0 %v1882_v20  ;;  %1212 = vmatmul.bf16.gmra.mxu1 %v1895_v21 }
  0xcf   : > { %1277 = vmatmul.bf16.gmra.mxu2 %v1908_v22  ;;  %1342 = vmatmul.bf16.gmra.mxu3 %v1921_v23 }
  0xde   : > { %1152 = vmatmul.bf16.gmra.mxu0 %v1883_v24  ;;  %1217 = vmatmul.bf16.gmra.mxu1 %v1896_v25 }
  0xdf   : > { %1282 = vmatmul.bf16.gmra.mxu2 %v1909_v26  ;;  %1347 = vmatmul.bf16.gmra.mxu3 %v1922_v27  ;;  %v1887_v26 = vld [vmem:[%s2277_s24 + $0x58] sm:$0xff]  ;;  %v1900_v27 = vld [vmem:[%s2277_s24 + $0xc0] sm:$0xff] }
  0xeb   : > { %v1118_v30 = vpop.f32.mrf.mxu0  ;;  %v1183_v31 = vpop.f32.mrf.mxu1 }
  0xec   : > { %v1378_v38 = vmax.f32 %v1118_v30, %v1183_v31 }
  0xee   : > { %1157 = vmatmul.bf16.gmra.mxu0 %v1884_v28  ;;  %1222 = vmatmul.bf16.gmra.mxu1 %v1897_v29 }
  0xef   : > { %1287 = vmatmul.bf16.gmra.mxu2 %v1910_v32  ;;  %1352 = vmatmul.bf16.gmra.mxu3 %v1923_v33  ;;  %v1913_v32 = vld [vmem:[%s2277_s24 + $0x128] sm:$0xff]  ;;  %v1926_v33 = vld [vmem:[%s2277_s24 + $0x190] sm:$0xff] }
  0xf2   : > { %v1248_v34 = vpop.f32.mrf.mxu2  ;;  %v1313_v35 = vpop.f32.mrf.mxu3 }
  0xf3   : > { %v1120_v36 = vpop.f32.mrf.mxu0  ;;  %v1185_v37 = vpop.f32.mrf.mxu1  ;;  %v1404_v39 = vmax.f32 %v1248_v34, %v1313_v35 }
  0xf4   : > { %v1379_v46 = vmax.f32 %v1120_v36, %v1185_v37 }
  0xf5   : > { %v1430_v40 = vmax.f32 %v1378_v38, %v1404_v39 }
  0xf7   : > { %v1460_v52 = vadd.f32 %v2320_v41, %v1430_v40 }
  0xf9   : > { %v1486_v55 = vmax.f32 %v1460_v52, 0.0 }
  0xfa   : > { %v1250_v42 = vpop.f32.mrf.mxu2  ;;  %v1315_v43 = vpop.f32.mrf.mxu3 }
  0xfb   : > { %v1405_v47 = vmax.f32 %v1250_v42, %v1315_v43  ;;  %v1123_v48 = vpop.f32.mrf.mxu0  ;;  %v1188_v49 = vpop.f32.mrf.mxu1 }
  0xfc   : > { %v1380_v62 = vmax.f32 %v1123_v48, %v1188_v49 }
  0xfd   : > { %v1431_v53 = vmax.f32 %v1379_v46, %v1405_v47 }
  0xfe   : > { %1162 = vmatmul.bf16.gmra.mxu0 %v1885_v44  ;;  %1227 = vmatmul.bf16.gmra.mxu1 %v1898_v45 }
  0xff   : > { %v1461_v54 = vadd.f32 %v2320_v41, %v1431_v53  ;;  %1292 = vmatmul.bf16.gmra.mxu2 %v1911_v50  ;;  %1357 = vmatmul.bf16.gmra.mxu3 %v1924_v51  ;;  %v1888_v50 = vld [vmem:[%s2277_s24 + $0x60] sm:$0xff]  ;;  %v1901_v51 = vld [vmem:[%s2277_s24 + $0xc8] sm:$0xff] }
 0x101   : > { %v1487_v56 = vmax.f32 %v1461_v54, 0.0 }
 0x102   : > { %v1253_v57 = vpop.f32.mrf.mxu2  ;;  %v1318_v58 = vpop.f32.mrf.mxu3 }
 0x103   : > { %v1939_v59 = vpack.c.bf16 %v1487_v56, %v1486_v55  ;;  %v1125_v60 = vpop.f32.mrf.mxu0  ;;  %v1190_v61 = vpop.f32.mrf.mxu1  ;;  %v1406_v63 = vmax.f32 %v1253_v57, %v1318_v58  ;;  %v1914_v56 = vld [vmem:[%s2277_s24 + $0x130] sm:$0xff]  ;;  %v1927_v57 = vld [vmem:[%s2277_s24 + $0x198] sm:$0xff] }
 0x104   : > { %v1381_v5 = vmax.f32 %v1125_v60, %v1190_v61 }
 0x105   : > { %1940 = vst [vmem:[%s2331_s28] sm:$0xff] %v1939_v59   ;;  %v1432_v0 = vmax.f32 %v1380_v62, %v1406_v63 }
 0x107   : > { %v1462_v11 = vadd.f32 %v2320_v41, %v1432_v0 }
 0x109   : > { %v1488_v14 = vmax.f32 %v1462_v11, 0.0 }
 0x10a   : > { %v1255_v1 = vpop.f32.mrf.mxu2  ;;  %v1320_v2 = vpop.f32.mrf.mxu3 }
 0x10b   : > { %v1407_v6 = vmax.f32 %v1255_v1, %v1320_v2  ;;  %v1128_v7 = vpop.f32.mrf.mxu0  ;;  %v1193_v8 = vpop.f32.mrf.mxu1 }
 0x10c   : > { %v1382_v21 = vmax.f32 %v1128_v7, %v1193_v8 }
 0x10d   : > { %v1433_v12 = vmax.f32 %v1381_v5, %v1407_v6 }
 0x10e   : > { %1167 = vmatmul.bf16.gmra.mxu0 %v1886_v3  ;;  %1232 = vmatmul.bf16.gmra.mxu1 %v1899_v4 }
 0x10f   : > { %v1463_v13 = vadd.f32 %v2320_v41, %v1433_v12  ;;  %1297 = vmatmul.bf16.gmra.mxu2 %v1912_v9  ;;  %1362 = vmatmul.bf16.gmra.mxu3 %v1925_v10 }
 0x111   : > { %v1489_v15 = vmax.f32 %v1463_v13, 0.0 }
 0x112   : > { %v1258_v16 = vpop.f32.mrf.mxu2  ;;  %v1323_v17 = vpop.f32.mrf.mxu3 }
 0x113   : > { %v1944_v18 = vpack.c.bf16 %v1489_v15, %v1488_v14  ;;  %v1130_v19 = vpop.f32.mrf.mxu0  ;;  %v1195_v20 = vpop.f32.mrf.mxu1  ;;  %v1408_v22 = vmax.f32 %v1258_v16, %v1323_v17 }
 0x114   : > { %v1383_v28 = vmax.f32 %v1130_v19, %v1195_v20 }
 0x115   : > { %2001 = vst [vmem:[%s2331_s28 + $0x8] sm:$0xff] %v1944_v18   ;;  %v1434_v23 = vmax.f32 %v1382_v21, %v1408_v22 }
 0x117   : > { %v1464_v34 = vadd.f32 %v2320_v41, %v1434_v23 }
 0x119   : > { %v1490_v37 = vmax.f32 %v1464_v34, 0.0 }
 0x11a   : > { %v1260_v24 = vpop.f32.mrf.mxu2  ;;  %v1325_v25 = vpop.f32.mrf.mxu3 }
 0x11b   : > { %v1409_v29 = vmax.f32 %v1260_v24, %v1325_v25  ;;  %v1133_v30 = vpop.f32.mrf.mxu0  ;;  %v1198_v31 = vpop.f32.mrf.mxu1 }
 0x11c   : > { %v1384_v45 = vmax.f32 %v1133_v30, %v1198_v31 }
 0x11d   : > { %v1435_v35 = vmax.f32 %v1383_v28, %v1409_v29 }
 0x11e   : > { %1172 = vmatmul.bf16.gmra.mxu0 %v1887_v26  ;;  %1237 = vmatmul.bf16.gmra.mxu1 %v1900_v27 }
 0x11f   : > { %v1465_v36 = vadd.f32 %v2320_v41, %v1435_v35  ;;  %1302 = vmatmul.bf16.gmra.mxu2 %v1913_v32  ;;  %1367 = vmatmul.bf16.gmra.mxu3 %v1926_v33 }
 0x121   : > { %v1491_v38 = vmax.f32 %v1465_v36, 0.0 }
 0x122   : > { %v1263_v39 = vpop.f32.mrf.mxu2  ;;  %v1328_v40 = vpop.f32.mrf.mxu3 }
 0x123   : > { %v1949_v42 = vpack.c.bf16 %v1491_v38, %v1490_v37  ;;  %v1135_v43 = vpop.f32.mrf.mxu0  ;;  %v1200_v44 = vpop.f32.mrf.mxu1  ;;  %v1410_v46 = vmax.f32 %v1263_v39, %v1328_v40 }
 0x124   : > { %v1385_v52 = vmax.f32 %v1135_v43, %v1200_v44 }
 0x125   : > { %2002 = vst [vmem:[%s2331_s28 + $0x10] sm:$0xff] %v1949_v42   ;;  %v1436_v47 = vmax.f32 %v1384_v45, %v1410_v46 }
 0x127   : > { %v1466_v58 = vadd.f32 %v2320_v41, %v1436_v47 }
 0x129   : > { %v1492_v61 = vmax.f32 %v1466_v58, 0.0 }
 0x12a   : > { %v1265_v48 = vpop.f32.mrf.mxu2  ;;  %v1330_v49 = vpop.f32.mrf.mxu3 }
 0x12b   : > { %v1411_v53 = vmax.f32 %v1265_v48, %v1330_v49  ;;  %v1138_v54 = vpop.f32.mrf.mxu0  ;;  %v1203_v55 = vpop.f32.mrf.mxu1 }
 0x12c   : > { %v1386_v4 = vmax.f32 %v1138_v54, %v1203_v55 }
 0x12d   : > { %v1437_v59 = vmax.f32 %v1385_v52, %v1411_v53 }
 0x12e   : > { %1177 = vmatmul.bf16.gmra.mxu0 %v1888_v50  ;;  %1242 = vmatmul.bf16.gmra.mxu1 %v1901_v51 }
 0x12f   : > { %v1467_v60 = vadd.f32 %v2320_v41, %v1437_v59  ;;  %1307 = vmatmul.bf16.gmra.mxu2 %v1914_v56  ;;  %1372 = vmatmul.bf16.gmra.mxu3 %v1927_v57 }
 0x131   : > { %v1493_v62 = vmax.f32 %v1467_v60, 0.0 }
 0x132   : > { %v1268_v63 = vpop.f32.mrf.mxu2  ;;  %v1333_v0 = vpop.f32.mrf.mxu3 }
 0x133   : > { %v1954_v1 = vpack.c.bf16 %v1493_v62, %v1492_v61  ;;  %v1140_v2 = vpop.f32.mrf.mxu0  ;;  %v1205_v3 = vpop.f32.mrf.mxu1  ;;  %v1412_v5 = vmax.f32 %v1268_v63, %v1333_v0 }
 0x134   : > { %v1387_v9 = vmax.f32 %v1140_v2, %v1205_v3 }
 0x135   : > { %2003 = vst [vmem:[%s2331_s28 + $0x18] sm:$0xff] %v1954_v1   ;;  %v1438_v6 = vmax.f32 %v1386_v4, %v1412_v5 }
 0x137   : > { %v1468_v13 = vadd.f32 %v2320_v41, %v1438_v6 }
 0x139   : > { %v1494_v16 = vmax.f32 %v1468_v13, 0.0 }
 0x13a   : > { %v1270_v7 = vpop.f32.mrf.mxu2  ;;  %v1335_v8 = vpop.f32.mrf.mxu3 }
 0x13b   : > { %v1413_v10 = vmax.f32 %v1270_v7, %v1335_v8  ;;  %v1143_v11 = vpop.f32.mrf.mxu0  ;;  %v1208_v12 = vpop.f32.mrf.mxu1 }
 0x13c   : > { %v1388_v23 = vmax.f32 %v1143_v11, %v1208_v12 }
 0x13d   : > { %v1439_v14 = vmax.f32 %v1387_v9, %v1413_v10 }
 0x13f   : > { %v1469_v15 = vadd.f32 %v2320_v41, %v1439_v14 }
 0x141   : > { %v1495_v17 = vmax.f32 %v1469_v15, 0.0 }
 0x142   : > { %v1273_v18 = vpop.f32.mrf.mxu2  ;;  %v1338_v19 = vpop.f32.mrf.mxu3 }
 0x143   : > { %v1959_v20 = vpack.c.bf16 %v1495_v17, %v1494_v16  ;;  %v1145_v21 = vpop.f32.mrf.mxu0  ;;  %v1210_v22 = vpop.f32.mrf.mxu1  ;;  %v1414_v24 = vmax.f32 %v1273_v18, %v1338_v19 }
 0x144   : > { %v1389_v28 = vmax.f32 %v1145_v21, %v1210_v22 }
 0x145   : > { %2004 = vst [vmem:[%s2331_s28 + $0x20] sm:$0xff] %v1959_v20   ;;  %v1440_v25 = vmax.f32 %v1388_v23, %v1414_v24 }
 0x147   : > { %v1470_v32 = vadd.f32 %v2320_v41, %v1440_v25 }
 0x149   : > { %v1496_v35 = vmax.f32 %v1470_v32, 0.0 }
 0x14a   : > { %v1275_v26 = vpop.f32.mrf.mxu2  ;;  %v1340_v27 = vpop.f32.mrf.mxu3 }
 0x14b   : > { %v1415_v29 = vmax.f32 %v1275_v26, %v1340_v27  ;;  %v1148_v30 = vpop.f32.mrf.mxu0  ;;  %v1213_v31 = vpop.f32.mrf.mxu1 }
 0x14c   : > { %v1390_v43 = vmax.f32 %v1148_v30, %v1213_v31 }
 0x14d   : > { %v1441_v33 = vmax.f32 %v1389_v28, %v1415_v29 }
 0x14f   : > { %v1471_v34 = vadd.f32 %v2320_v41, %v1441_v33 }
 0x151   : > { %v1497_v36 = vmax.f32 %v1471_v34, 0.0 }
 0x152   : > { %v1278_v37 = vpop.f32.mrf.mxu2  ;;  %v1343_v38 = vpop.f32.mrf.mxu3 }
 0x153   : > { %v1964_v39 = vpack.c.bf16 %v1497_v36, %v1496_v35  ;;  %v1150_v40 = vpop.f32.mrf.mxu0  ;;  %v1215_v42 = vpop.f32.mrf.mxu1  ;;  %v1416_v44 = vmax.f32 %v1278_v37, %v1343_v38 }
 0x154   : > { %v1391_v48 = vmax.f32 %v1150_v40, %v1215_v42 }
 0x155   : > { %2005 = vst [vmem:[%s2331_s28 + $0x28] sm:$0xff] %v1964_v39   ;;  %v1442_v45 = vmax.f32 %v1390_v43, %v1416_v44 }
 0x157   : > { %v1472_v52 = vadd.f32 %v2320_v41, %v1442_v45 }
 0x159   : > { %v1498_v55 = vmax.f32 %v1472_v52, 0.0 }
 0x15a   : > { %v1280_v46 = vpop.f32.mrf.mxu2  ;;  %v1345_v47 = vpop.f32.mrf.mxu3 }
 0x15b   : > { %v1417_v49 = vmax.f32 %v1280_v46, %v1345_v47  ;;  %v1153_v50 = vpop.f32.mrf.mxu0  ;;  %v1218_v51 = vpop.f32.mrf.mxu1 }
 0x15c   : > { %v1392_v62 = vmax.f32 %v1153_v50, %v1218_v51 }
 0x15d   : > { %v1443_v53 = vmax.f32 %v1391_v48, %v1417_v49 }
 0x15f   : > { %v1473_v54 = vadd.f32 %v2320_v41, %v1443_v53 }
 0x161   : > { %v1499_v56 = vmax.f32 %v1473_v54, 0.0 }
 0x162   : > { %v1283_v57 = vpop.f32.mrf.mxu2  ;;  %v1348_v58 = vpop.f32.mrf.mxu3 }
 0x163   : > { %v1969_v59 = vpack.c.bf16 %v1499_v56, %v1498_v55  ;;  %v1155_v60 = vpop.f32.mrf.mxu0  ;;  %v1220_v61 = vpop.f32.mrf.mxu1  ;;  %v1418_v63 = vmax.f32 %v1283_v57, %v1348_v58 }
 0x164   : > { %v1393_v3 = vmax.f32 %v1155_v60, %v1220_v61 }
 0x165   : > { %2006 = vst [vmem:[%s2331_s28 + $0x30] sm:$0xff] %v1969_v59   ;;  %v1444_v0 = vmax.f32 %v1392_v62, %v1418_v63 }
 0x167   : > { %v1474_v7 = vadd.f32 %v2320_v41, %v1444_v0 }
 0x169   : > { %v1500_v10 = vmax.f32 %v1474_v7, 0.0 }
 0x16a   : > { %v1285_v1 = vpop.f32.mrf.mxu2  ;;  %v1350_v2 = vpop.f32.mrf.mxu3 }
 0x16b   : > { %v1419_v4 = vmax.f32 %v1285_v1, %v1350_v2  ;;  %v1158_v5 = vpop.f32.mrf.mxu0  ;;  %v1223_v6 = vpop.f32.mrf.mxu1 }
 0x16c   : > { %v1394_v17 = vmax.f32 %v1158_v5, %v1223_v6 }
 0x16d   : > { %v1445_v8 = vmax.f32 %v1393_v3, %v1419_v4 }
 0x16f   : > { %v1475_v9 = vadd.f32 %v2320_v41, %v1445_v8 }
 0x171   : > { %v1501_v11 = vmax.f32 %v1475_v9, 0.0 }
 0x172   : > { %v1288_v12 = vpop.f32.mrf.mxu2  ;;  %v1353_v13 = vpop.f32.mrf.mxu3 }
 0x173   : > { %v1974_v14 = vpack.c.bf16 %v1501_v11, %v1500_v10  ;;  %v1160_v15 = vpop.f32.mrf.mxu0  ;;  %v1225_v16 = vpop.f32.mrf.mxu1  ;;  %v1420_v18 = vmax.f32 %v1288_v12, %v1353_v13 }
 0x174   : > { %v1395_v22 = vmax.f32 %v1160_v15, %v1225_v16 }
 0x175   : > { %2007 = vst [vmem:[%s2331_s28 + $0x38] sm:$0xff] %v1974_v14   ;;  %v1446_v19 = vmax.f32 %v1394_v17, %v1420_v18 }
 0x177   : > { %v1476_v26 = vadd.f32 %v2320_v41, %v1446_v19 }
 0x179   : > { %v1502_v29 = vmax.f32 %v1476_v26, 0.0 }
 0x17a   : > { %v1290_v20 = vpop.f32.mrf.mxu2  ;;  %v1355_v21 = vpop.f32.mrf.mxu3 }
 0x17b   : > { %v1421_v23 = vmax.f32 %v1290_v20, %v1355_v21  ;;  %v1163_v24 = vpop.f32.mrf.mxu0  ;;  %v1228_v25 = vpop.f32.mrf.mxu1 }
 0x17c   : > { %v1396_v36 = vmax.f32 %v1163_v24, %v1228_v25 }
 0x17d   : > { %v1447_v27 = vmax.f32 %v1395_v22, %v1421_v23 }
 0x17f   : > { %v1477_v28 = vadd.f32 %v2320_v41, %v1447_v27 }
 0x181   : > { %v1503_v30 = vmax.f32 %v1477_v28, 0.0 }
 0x182   : > { %v1293_v31 = vpop.f32.mrf.mxu2  ;;  %v1358_v32 = vpop.f32.mrf.mxu3 }
 0x183   : > { %v1979_v33 = vpack.c.bf16 %v1503_v30, %v1502_v29  ;;  %v1165_v34 = vpop.f32.mrf.mxu0  ;;  %v1230_v35 = vpop.f32.mrf.mxu1  ;;  %v1422_v37 = vmax.f32 %v1293_v31, %v1358_v32 }
 0x184   : > { %v1397_v42 = vmax.f32 %v1165_v34, %v1230_v35 }
 0x185   : > { %2008 = vst [vmem:[%s2331_s28 + $0x40] sm:$0xff] %v1979_v33   ;;  %v1448_v38 = vmax.f32 %v1396_v36, %v1422_v37 }
 0x187   : > { %v1478_v46 = vadd.f32 %v2320_v41, %v1448_v38 }
 0x189   : > { %v1504_v49 = vmax.f32 %v1478_v46, 0.0 }
 0x18a   : > { %v1295_v39 = vpop.f32.mrf.mxu2  ;;  %v1360_v40 = vpop.f32.mrf.mxu3 }
 0x18b   : > { %v1423_v43 = vmax.f32 %v1295_v39, %v1360_v40  ;;  %v1168_v44 = vpop.f32.mrf.mxu0  ;;  %v1233_v45 = vpop.f32.mrf.mxu1 }
 0x18c   : > { %v1398_v56 = vmax.f32 %v1168_v44, %v1233_v45 }
 0x18d   : > { %v1449_v47 = vmax.f32 %v1397_v42, %v1423_v43 }
 0x18f   : > { %v1479_v48 = vadd.f32 %v2320_v41, %v1449_v47 }
 0x191   : > { %v1505_v50 = vmax.f32 %v1479_v48, 0.0 }
 0x192   : > { %v1298_v51 = vpop.f32.mrf.mxu2  ;;  %v1363_v52 = vpop.f32.mrf.mxu3 }
 0x193   : > { %v1984_v53 = vpack.c.bf16 %v1505_v50, %v1504_v49  ;;  %v1170_v54 = vpop.f32.mrf.mxu0  ;;  %v1235_v55 = vpop.f32.mrf.mxu1  ;;  %v1424_v57 = vmax.f32 %v1298_v51, %v1363_v52 }
 0x194   : > { %v1399_v61 = vmax.f32 %v1170_v54, %v1235_v55 }
 0x195   : > { %2009 = vst [vmem:[%s2331_s28 + $0x48] sm:$0xff] %v1984_v53   ;;  %v1450_v58 = vmax.f32 %v1398_v56, %v1424_v57 }
 0x197   : > { %v1480_v1 = vadd.f32 %v2320_v41, %v1450_v58 }
 0x199   : > { %v1506_v4 = vmax.f32 %v1480_v1, 0.0 }
 0x19a   : > { %v1300_v59 = vpop.f32.mrf.mxu2  ;;  %v1365_v60 = vpop.f32.mrf.mxu3 }
 0x19b   : > { %v1425_v62 = vmax.f32 %v1300_v59, %v1365_v60  ;;  %v1173_v63 = vpop.f32.mrf.mxu0  ;;  %v1238_v0 = vpop.f32.mrf.mxu1 }
 0x19c   : > { %v1400_v11 = vmax.f32 %v1173_v63, %v1238_v0 }
 0x19d   : > { %v1451_v2 = vmax.f32 %v1399_v61, %v1425_v62 }
 0x19f   : > { %v1481_v3 = vadd.f32 %v2320_v41, %v1451_v2 }
 0x1a1   : > { %v1507_v5 = vmax.f32 %v1481_v3, 0.0 }
 0x1a2   : > { %v1303_v6 = vpop.f32.mrf.mxu2  ;;  %v1368_v7 = vpop.f32.mrf.mxu3 }
 0x1a3   : > { %v1989_v8 = vpack.c.bf16 %v1507_v5, %v1506_v4  ;;  %v1175_v9 = vpop.f32.mrf.mxu0  ;;  %v1240_v10 = vpop.f32.mrf.mxu1  ;;  %v1426_v12 = vmax.f32 %v1303_v6, %v1368_v7 }
 0x1a4   : > { %v1401_v16 = vmax.f32 %v1175_v9, %v1240_v10 }
 0x1a5   : > { %2010 = vst [vmem:[%s2331_s28 + $0x50] sm:$0xff] %v1989_v8   ;;  %v1452_v13 = vmax.f32 %v1400_v11, %v1426_v12 }
 0x1a7   : > { %v1482_v18 = vadd.f32 %v2320_v41, %v1452_v13 }
 0x1a9   : > { %v1508_v23 = vmax.f32 %v1482_v18, 0.0 }
 0x1aa   : > { %v1305_v14 = vpop.f32.mrf.mxu2  ;;  %v1370_v15 = vpop.f32.mrf.mxu3 }
 0x1ab   : > { %v1427_v17 = vmax.f32 %v1305_v14, %v1370_v15  ;;  %v1178_v20 = vpop.f32.mrf.mxu0  ;;  %v1243_v21 = vpop.f32.mrf.mxu1 }
 0x1ac   : > { %v1402_v28 = vmax.f32 %v1178_v20, %v1243_v21 }
 0x1ad   : > { %v1453_v19 = vmax.f32 %v1401_v16, %v1427_v17 }
 0x1af   : > { %v1483_v22 = vadd.f32 %v2320_v41, %v1453_v19 }
 0x1b1   : > { %v1509_v24 = vmax.f32 %v1483_v22, 0.0 }
 0x1b2   : > { %v1308_v25 = vpop.f32.mrf.mxu2  ;;  %v1373_v26 = vpop.f32.mrf.mxu3 }
 0x1b3   : > { %v1994_v27 = vpack.c.bf16 %v1509_v24, %v1508_v23  ;;  %v1428_v29 = vmax.f32 %v1308_v25, %v1373_v26  ;;  %v1180_v30 = vpop.f32.mrf.mxu0  ;;  %v1245_v31 = vpop.f32.mrf.mxu1 }
 0x1b4   : > { %v1403_v35 = vmax.f32 %v1180_v30, %v1245_v31 }
 0x1b5   : > { %2011 = vst [vmem:[%s2331_s28 + $0x58] sm:$0xff] %v1994_v27   ;;  %v1454_v32 = vmax.f32 %v1402_v28, %v1428_v29 }
 0x1b7   : > { %v1484_v37 = vadd.f32 %v2320_v41, %v1454_v32 }
 0x1b9   : > { %v1510_v40 = vmax.f32 %v1484_v37, 0.0 }
 0x1ba   : > { %v1310_v33 = vpop.f32.mrf.mxu2  ;;  %v1375_v34 = vpop.f32.mrf.mxu3 }
 0x1bb   : > { %v1429_v36 = vmax.f32 %v1310_v33, %v1375_v34 }
 0x1bd   : > { %v1455_v38 = vmax.f32 %v1403_v35, %v1429_v36 }
 0x1bf   : > { %v1485_v39 = vadd.f32 %v2320_v41, %v1455_v38 }
 0x1c1   : > { %v1511_v42 = vmax.f32 %v1485_v39, 0.0 }
 0x1c3   : > { %v1999_v43 = vpack.c.bf16 %v1511_v42, %v1510_v40 }
 0x1c5   : > { %2012 = vst [vmem:[%s2331_s28 + $0x60] sm:$0xff] %v1999_v43  }
 0x1c6 PF: > { %p10_p9 = scmp.ge.s32.totalorder %s2125_s16, 4   ;;  %s2396_s12 = smov %s2082_s13 }
 0x1c7   : > { %s2397_s13 = smov %s2134_s19  ;;  %s2398_s14 = smov %s2125_s16 }
 0x1c8   :  { %12 = sbr.rel (!%p10_p9) target bundleno = 2 (0x2), region = 108 }

// kernel: hyrax_cnn_forward.4
= control target key start
LH: loop header
LB: loop body
LE: loop exit
PB: predicated region body
PF: predicated region fallthrough
CT: control target
= control target key end

     0   :  { %s958_s12 = smov 0   ;;  %s960_s13 = smov 0   ;;  %s1113_s0 = inlined_call_operand.vmem [shape: bf16[4,64,256], index: 0, kind: input, shape index: {}]   ;;  %s1114_s1 = inlined_call_operand.vmem [shape: bf16[256,128], index: 1, kind: input, shape index: {}]   ;;  %s1115_s2 = inlined_call_operand.vmem [shape: f32[1,128], index: 2, kind: input, shape index: {}]   ;;  %s1116_s3 = inlined_call_operand.vmem [shape: bf16[64,128], index: 3, kind: output, shape index: {}]  }
   0x1   :  { %s962_s14 = smov 0  }
   0x2 LB: > { %s686_s15 = sadd.s32 4294967295, %s936_s14   ;;  %s975_s16 = sadd.s32 1, %s936_s14   ;;  %s936_s14 = sphi %s962_s14, %s1119_s14   ;;  %s932_s13 = sphi %s960_s13, %s1118_s13   ;;  %s928_s12 = sphi %s958_s12, %s1117_s12  }
   0x3   : > { %s17_s17 = ssub.s32 %s936_s14, %s975_s16  ;;  %s20_s18 = sadd.s32 1, %s932_s13 }
   0x4   : > { %p18_p0 = scmp.eq.s32.totalorder %s17_s17, 0  ;;  %p27_p1 = scmp.ne.s32.totalorder %s932_s13, %s928_s12 }
   0x5   : > { %p28_p2 = scmp.eq.s32.totalorder %s936_s14, 0  ;;  %p689_p4 = scmp.ge.s32.totalorder %s936_s14, 2 }
   0x6   : > { %s984_s19 = scalar_select %p18_p0, %s932_s13, %s20_s18  }
   0x7   : > { %p29_p3 = por %p28_p2, %p27_p1  ;;  %127 = sbr.rel (%p689_p4) target bundleno = 32 (0x20), region = 24 }
   0xc   : > { %130 = sbr.rel (!%p29_p3) target bundleno = 32 (0x20), region = 28  ;;  %s132_s20 = sand.u32 (%p29_p3), 1, %s932_s13  }
   0xd   : > { %s829_s21 = sshll.u32 (%p29_p3), %s936_s14, 5  ;;  %s690_s22 = sshll.u32 (%p29_p3), %s132_s20, 7 }
   0xe   : > { %s992_s25 = scalar_lea.vmem (%p29_p3), %s1113_s0, %s829_s21  ;;  %s134_s26 = scalar_lea.vmem (%p29_p3), [#allocation2], %s690_s22 }
   0xf   : > { %v197_v0 = vld [vmem:[%s992_s25] sm:$0xff] (%p29_p3)  ;;  %v199_v1 = vld [vmem:[%s992_s25 + $0x8] sm:$0xff] (%p29_p3)  ;;  %v201_v2 = vld [vmem:[%s992_s25 + $0x10] sm:$0xff] (%p29_p3) }
  0x10   : > { %198 = vst [vmem:[%s134_s26] sm:$0xff] (%p29_p3), %v197_v0  ;;  %v203_v3 = vld [vmem:[%s992_s25 + $0x18] sm:$0xff] (%p29_p3)  ;;  %v205_v4 = vld [vmem:[%s992_s25 + $0x40] sm:$0xff] (%p29_p3)  ;;  %v207_v5 = vld [vmem:[%s992_s25 + $0x48] sm:$0xff] (%p29_p3) }
  0x11   : > { %200 = vst [vmem:[%s134_s26 + $0x8] sm:$0xff] %v199_v1  ;;  %v209_v6 = vld [vmem:[%s992_s25 + $0x50] sm:$0xff]  ;;  %v211_v7 = vld [vmem:[%s992_s25 + $0x58] sm:$0xff]  ;;  %v213_v8 = vld [vmem:[%s992_s25 + $0x80] sm:$0xff] }
  0x12   : > { %202 = vst [vmem:[%s134_s26 + $0x10] sm:$0xff] %v201_v2  ;;  %v215_v9 = vld [vmem:[%s992_s25 + $0x88] sm:$0xff]  ;;  %v217_v10 = vld [vmem:[%s992_s25 + $0x90] sm:$0xff]  ;;  %v219_v11 = vld [vmem:[%s992_s25 + $0x98] sm:$0xff] }
  0x13   : > { %204 = vst [vmem:[%s134_s26 + $0x18] sm:$0xff] %v203_v3  ;;  %v221_v12 = vld [vmem:[%s992_s25 + $0xc0] sm:$0xff]  ;;  %v223_v13 = vld [vmem:[%s992_s25 + $0xc8] sm:$0xff]  ;;  %v225_v14 = vld [vmem:[%s992_s25 + $0xd0] sm:$0xff] }
  0x14   : > { %206 = vst [vmem:[%s134_s26 + $0x20] sm:$0xff] %v205_v4  ;;  %v227_v15 = vld [vmem:[%s992_s25 + $0xd8] sm:$0xff] }
  0x15   : > { %208 = vst [vmem:[%s134_s26 + $0x28] sm:$0xff] %v207_v5 }
  0x16   : > { %210 = vst [vmem:[%s134_s26 + $0x30] sm:$0xff] %v209_v6 }
  0x17   : > { %212 = vst [vmem:[%s134_s26 + $0x38] sm:$0xff] %v211_v7 }
  0x18   : > { %214 = vst [vmem:[%s134_s26 + $0x40] sm:$0xff] %v213_v8 }
  0x19   : > { %216 = vst [vmem:[%s134_s26 + $0x48] sm:$0xff] %v215_v9 }
  0x1a   : > { %218 = vst [vmem:[%s134_s26 + $0x50] sm:$0xff] %v217_v10 }
  0x1b   : > { %220 = vst [vmem:[%s134_s26 + $0x58] sm:$0xff] %v219_v11 }
  0x1c   : > { %222 = vst [vmem:[%s134_s26 + $0x60] sm:$0xff] %v221_v12 }
  0x1d   : > { %224 = vst [vmem:[%s134_s26 + $0x68] sm:$0xff] %v223_v13 }
  0x1e   : > { %226 = vst [vmem:[%s134_s26 + $0x70] sm:$0xff] %v225_v14 }
  0x1f   : > { %228 = vst [vmem:[%s134_s26 + $0x78] sm:$0xff] %v227_v15 }
  0x20 PF: > { %p694_p5 = scmp.ge.s32.totalorder %s936_s14, 1  ;;  %p233_p6 = scmp.lt.s32.totalorder %s936_s14, 3 }
  0x22   : > { %p234_p7 = pnand %p694_p5, %p233_p6 }
  0x23   : > { %s240_s26 = sand.u32 (!%p234_p7), 1, %s928_s12   ;;  %s696_s18 = sshll.u32 (!%p234_p7), %s686_s15, 2 }
  0x24   : > { %237 = sbr.rel (%p234_p7) target bundleno = 275 (0x113), region = 66  ;;  %s695_s4 = sshll.u32 (!%p234_p7), %s240_s26, 7 }
  0x25   : > { %s1061_s17 = scalar_lea.vmem (!%p234_p7), [#allocation2], %s695_s4  ;;  %p265_p8 = scmp.lt.s32.totalorder (!%p234_p7), %s696_s18, 7 }
  0x29   : > { %v853_v16 = vld [vmem:[%s1114_s1 + $0x38] sm:$0xff]  ;;  %v852_v18 = vld [vmem:[%s1114_s1 + $0x30] sm:$0xff]  ;;  %v851_v20 = vld [vmem:[%s1114_s1 + $0x28] sm:$0xff]  ;;  %s1121_s18 = smov (!%p265_p8, %s696_s18), 7 }
  0x2a   : > { %v861_v17 = vld [vmem:[%s1114_s1 + $0x78] sm:$0xff]  ;;  %494 = vmatpush.bf16.msra.mxu0 %v853_v16  ;;  %873 = vmatpush.bf16.msra.mxu2 %v853_v16  ;;  %v860_v19 = vld [vmem:[%s1114_s1 + $0x70] sm:$0xff]  ;;  %v859_v21 = vld [vmem:[%s1114_s1 + $0x68] sm:$0xff]  ;;  %s697_s14 = sshll.u32 %s1121_s18, 2 }
  0x2b   : > { %543 = vmatpush.bf16.msra.mxu1 %v861_v17  ;;  %881 = vmatpush.bf16.msra.mxu3 %v861_v17  ;;  %v850_v22 = vld [vmem:[%s1114_s1 + $0x20] sm:$0xff]  ;;  %v849_v24 = vld [vmem:[%s1114_s1 + $0x18] sm:$0xff]  ;;  %v848_v26 = vld [vmem:[%s1114_s1 + $0x10] sm:$0xff]  ;;  %s268_s23 = scalar_lea.vmem %s1116_s3, %s697_s14 }
  0x2c   : > { %v858_v23 = vld [vmem:[%s1114_s1 + $0x60] sm:$0xff]  ;;  %v857_v25 = vld [vmem:[%s1114_s1 + $0x58] sm:$0xff]  ;;  %v856_v27 = vld [vmem:[%s1114_s1 + $0x50] sm:$0xff] }
  0x2d   : > { %v847_v28 = vld [vmem:[%s1114_s1 + $0x8] sm:$0xff]  ;;  %v846_v30 = vld [vmem:[%s1114_s1] sm:$0xff]  ;;  %v708_v44 = vld [vmem:[%s1061_s17 + $0x10] sm:$0xf] }
  0x2e   : > { %495 = vmatpush.bf16.msra.mxu0 %v852_v18  ;;  %874 = vmatpush.bf16.msra.mxu2 %v852_v18  ;;  %v855_v29 = vld [vmem:[%s1114_s1 + $0x48] sm:$0xff]  ;;  %v854_v31 = vld [vmem:[%s1114_s1 + $0x40] sm:$0xff]  ;;  %v833_v45 = vld [vmem:[%s1061_s17 + $0x14] sm:$0xf0] }
  0x2f   : > { %544 = vmatpush.bf16.msra.mxu1 %v860_v19  ;;  %882 = vmatpush.bf16.msra.mxu3 %v860_v19  ;;  %v700_v32 = vld [vmem:[%s1061_s17] sm:$0xf]  ;;  %v831_v33 = vld [vmem:[%s1061_s17 + $0x4] sm:$0xf0]  ;;  %v830_v36 = vld [vmem:[%s1061_s17 + $0x4] sm:$0xf]  ;;  %v709_v52 = vor.u32 %v833_v45, %v708_v44 }
  0x30   : > { %v732_v34 = vld [vmem:[%s1061_s17 + $0x40] sm:$0xf]  ;;  %v839_v35 = vld [vmem:[%s1061_s17 + $0x44] sm:$0xf0]  ;;  %v702_v37 = vld [vmem:[%s1061_s17 + $0x8] sm:$0xf0]  ;;  %v701_v40 = vor.u32 %v831_v33, %v700_v32 }
  0x31   : > { %v838_v38 = vld [vmem:[%s1061_s17 + $0x44] sm:$0xf]  ;;  %v734_v39 = vld [vmem:[%s1061_s17 + $0x48] sm:$0xf0]  ;;  %v733_v41 = vor.u32 %v839_v35, %v732_v34  ;;  %v705_v42 = vor.u32 %v830_v36, %v702_v37  ;;  %v740_v46 = vld [vmem:[%s1061_s17 + $0x50] sm:$0xf] }
  0x32   : > { %496 = vmatpush.bf16.msra.mxu0 %v851_v20  ;;  %875 = vmatpush.bf16.msra.mxu2 %v851_v20  ;;  %v737_v43 = vor.u32 %v838_v38, %v734_v39  ;;  %v841_v47 = vld [vmem:[%s1061_s17 + $0x54] sm:$0xf0]  ;;  %v832_v48 = vld [vmem:[%s1061_s17 + $0x14] sm:$0xf]  ;;  %v710_v49 = vld [vmem:[%s1061_s17 + $0x18] sm:$0xf0] }
  0x33   : > { %545 = vmatpush.bf16.msra.mxu1 %v859_v21  ;;  %883 = vmatpush.bf16.msra.mxu3 %v859_v21  ;;  %v840_v50 = vld [vmem:[%s1061_s17 + $0x54] sm:$0xf]  ;;  %v742_v51 = vld [vmem:[%s1061_s17 + $0x58] sm:$0xf0]  ;;  %v741_v53 = vor.u32 %v841_v47, %v740_v46  ;;  %v713_v54 = vor.u32 %v832_v48, %v710_v49  ;;  %v716_v56 = vld [vmem:[%s1061_s17 + $0x20] sm:$0xf] }
  0x34   : > { %v745_v55 = vor.u32 %v840_v50, %v742_v51  ;;  %v835_v57 = vld [vmem:[%s1061_s17 + $0x24] sm:$0xf0]  ;;  %v748_v58 = vld [vmem:[%s1061_s17 + $0x60] sm:$0xf]  ;;  %v834_v60 = vld [vmem:[%s1061_s17 + $0x24] sm:$0xf] }
  0x35   : > { %v843_v59 = vld [vmem:[%s1061_s17 + $0x64] sm:$0xf0]  ;;  %v718_v61 = vld [vmem:[%s1061_s17 + $0x28] sm:$0xf0]  ;;  %v842_v62 = vld [vmem:[%s1061_s17 + $0x64] sm:$0xf]  ;;  %v717_v0 = vor.u32 %v835_v57, %v716_v56 }
  0x36   : > { %497 = vmatpush.bf16.msra.mxu0 %v850_v22  ;;  %876 = vmatpush.bf16.msra.mxu2 %v850_v22  ;;  %v750_v63 = vld [vmem:[%s1061_s17 + $0x68] sm:$0xf0]  ;;  %v749_v1 = vor.u32 %v843_v59, %v748_v58  ;;  %v721_v2 = vor.u32 %v834_v60, %v718_v61  ;;  %v724_v4 = vld [vmem:[%s1061_s17 + $0x30] sm:$0xf]  ;;  %v837_v5 = vld [vmem:[%s1061_s17 + $0x34] sm:$0xf0] }
  0x37   : > { %546 = vmatpush.bf16.msra.mxu1 %v858_v23  ;;  %884 = vmatpush.bf16.msra.mxu3 %v858_v23  ;;  %v753_v3 = vor.u32 %v842_v62, %v750_v63  ;;  %v756_v6 = vld [vmem:[%s1061_s17 + $0x70] sm:$0xf]  ;;  %v845_v7 = vld [vmem:[%s1061_s17 + $0x74] sm:$0xf0]  ;;  %v836_v8 = vld [vmem:[%s1061_s17 + $0x34] sm:$0xf]  ;;  %v725_v12 = vor.u32 %v837_v5, %v724_v4 }
  0x38   : > { %v726_v9 = vld [vmem:[%s1061_s17 + $0x38] sm:$0xf0]  ;;  %v844_v10 = vld [vmem:[%s1061_s17 + $0x74] sm:$0xf]  ;;  %v757_v13 = vor.u32 %v845_v7, %v756_v6  ;;  %v913_v50 = vld [vmem:[%s1115_s2] ss:$0 sm:$0xff] }
  0x39   : > { %v758_v11 = vld [vmem:[%s1061_s17 + $0x78] sm:$0xf0]  ;;  %v729_v14 = vor.u32 %v836_v8, %v726_v9 }
  0x3a   : > { %498 = vmatpush.bf16.msra.mxu0 %v849_v24  ;;  %877 = vmatpush.bf16.msra.mxu2 %v849_v24  ;;  %v761_v15 = vor.u32 %v844_v10, %v758_v11 }
  0x3b   : > { %547 = vmatpush.bf16.msra.mxu1 %v857_v25  ;;  %885 = vmatpush.bf16.msra.mxu3 %v857_v25 }
  0x3e   : > { %499 = vmatpush.bf16.msra.mxu0 %v848_v26  ;;  %878 = vmatpush.bf16.msra.mxu2 %v848_v26 }
  0x3f   : > { %548 = vmatpush.bf16.msra.mxu1 %v856_v27  ;;  %886 = vmatpush.bf16.msra.mxu3 %v856_v27 }
  0x42   : > { %500 = vmatpush.bf16.msra.mxu0 %v847_v28  ;;  %879 = vmatpush.bf16.msra.mxu2 %v847_v28 }
  0x43   : > { %549 = vmatpush.bf16.msra.mxu1 %v855_v29  ;;  %887 = vmatpush.bf16.msra.mxu3 %v855_v29 }
  0x46   : > { %501 = vmatpush.bf16.msra.mxu0 %v846_v30  ;;  %880 = vmatpush.bf16.msra.mxu2 %v846_v30 }
  0x47   : > { %550 = vmatpush.bf16.msra.mxu1 %v854_v31  ;;  %888 = vmatpush.bf16.msra.mxu3 %v854_v31 }
  0x49   : > { %502 = vmatmul.bf16.vlgmr.msra.gmra.mxu0 %v701_v40  ;;  %522 = vmatmul.bf16.vlgmr.msra.gmra.mxu2 %v733_v41 }
  0x4a   : > { %551 = vmatmul.bf16.vlgmr.msra.gmra.mxu1 %v705_v42  ;;  %571 = vmatmul.bf16.vlgmr.msra.gmra.mxu3 %v737_v43 }
  0x59   : > { %507 = vmatmul.bf16.gmra.mxu0 %v709_v52  ;;  %527 = vmatmul.bf16.gmra.mxu2 %v741_v53 }
  0x5a   : > { %556 = vmatmul.bf16.gmra.mxu1 %v713_v54  ;;  %576 = vmatmul.bf16.gmra.mxu3 %v745_v55 }
  0x69   : > { %512 = vmatmul.bf16.gmra.mxu0 %v717_v0  ;;  %532 = vmatmul.bf16.gmra.mxu2 %v749_v1 }
  0x6a   : > { %561 = vmatmul.bf16.gmra.mxu1 %v721_v2  ;;  %581 = vmatmul.bf16.gmra.mxu3 %v753_v3 }
  0x79   : > { %517 = vmatmul.bf16.gmra.mxu0 %v725_v12  ;;  %537 = vmatmul.bf16.gmra.mxu2 %v757_v13 }
  0x7a   : > { %566 = vmatmul.bf16.gmra.mxu1 %v729_v14  ;;  %586 = vmatmul.bf16.gmra.mxu3 %v761_v15 }
  0xc6   : > { %v503_v16 = vpop.f32.mrf.mxu0 }
  0xc7   : > { %v552_v17 = vpop.f32.mrf.mxu1 }
  0xc8   : > { %v553_v41 = vadd.f32 %v552_v17, %v503_v16 }
  0xcc   : > { %v523_v18 = vpop.f32.mrf.mxu2 }
  0xcd   : > { %v572_v19 = vpop.f32.mrf.mxu3 }
  0xce   : > { %v505_v20 = vpop.f32.mrf.mxu0  ;;  %v573_v39 = vadd.f32 %v572_v19, %v523_v18 }
  0xcf   : > { %v554_v21 = vpop.f32.mrf.mxu1 }
  0xd0   : > { %v555_v47 = vadd.f32 %v554_v21, %v505_v20 }
  0xd4   : > { %v525_v22 = vpop.f32.mrf.mxu2 }
  0xd5   : > { %v574_v23 = vpop.f32.mrf.mxu3 }
  0xd6   : > { %v508_v24 = vpop.f32.mrf.mxu0  ;;  %v575_v48 = vadd.f32 %v574_v23, %v525_v22 }
  0xd7   : > { %v557_v25 = vpop.f32.mrf.mxu1 }
  0xd8   : > { %v558_v5 = vadd.f32 %v557_v25, %v508_v24 }
  0xdc   : > { %v528_v26 = vpop.f32.mrf.mxu2 }
  0xdd   : > { %v577_v27 = vpop.f32.mrf.mxu3 }
  0xde   : > { %v510_v28 = vpop.f32.mrf.mxu0  ;;  %v578_v0 = vadd.f32 %v577_v27, %v528_v26 }
  0xdf   : > { %v559_v29 = vpop.f32.mrf.mxu1 }
  0xe0   : > { %v560_v11 = vadd.f32 %v559_v29, %v510_v28 }
  0xe4   : > { %v530_v30 = vpop.f32.mrf.mxu2 }
  0xe5   : > { %v579_v31 = vpop.f32.mrf.mxu3 }
  0xe6   : > { %v513_v32 = vpop.f32.mrf.mxu0  ;;  %v580_v12 = vadd.f32 %v579_v31, %v530_v30 }
  0xe7   : > { %v562_v33 = vpop.f32.mrf.mxu1 }
  0xe8   : > { %v563_v40 = vadd.f32 %v562_v33, %v513_v32 }
  0xea   : > { %v592_v43 = vmax.f32 %v553_v41, %v563_v40 }
  0xec   : > { %v533_v34 = vpop.f32.mrf.mxu2 }
  0xed   : > { %v582_v35 = vpop.f32.mrf.mxu3 }
  0xee   : > { %v583_v36 = vadd.f32 %v582_v35, %v533_v34  ;;  %v515_v37 = vpop.f32.mrf.mxu0 }
  0xef   : > { %v564_v38 = vpop.f32.mrf.mxu1 }
  0xf0   : > { %v596_v42 = vmax.f32 %v573_v39, %v583_v36  ;;  %v565_v44 = vadd.f32 %v564_v38, %v515_v37 }
  0xf2   : > { %v600_v49 = vmax.f32 %v592_v43, %v596_v42  ;;  %v593_v54 = vmax.f32 %v555_v47, %v565_v44 }
  0xf4   : > { %v535_v45 = vpop.f32.mrf.mxu2  ;;  %v608_v56 = vadd.f32 %v913_v50, %v600_v49 }
  0xf5   : > { %v584_v46 = vpop.f32.mrf.mxu3 }
  0xf6   : > { %v585_v51 = vadd.f32 %v584_v46, %v535_v45  ;;  %v518_v52 = vpop.f32.mrf.mxu0  ;;  %v612_v61 = vmax.f32 %v608_v56, 0.0 }
  0xf7   : > { %v567_v53 = vpop.f32.mrf.mxu1 }
  0xf8   : > { %v597_v55 = vmax.f32 %v575_v48, %v585_v51  ;;  %v568_v2 = vadd.f32 %v567_v53, %v518_v52 }
  0xfa   : > { %v601_v57 = vmax.f32 %v593_v54, %v597_v55  ;;  %v594_v7 = vmax.f32 %v558_v5, %v568_v2 }
  0xfc   : > { %v609_v58 = vadd.f32 %v913_v50, %v601_v57  ;;  %v538_v59 = vpop.f32.mrf.mxu2 }
  0xfd   : > { %v587_v60 = vpop.f32.mrf.mxu3 }
  0xfe   : > { %v613_v62 = vmax.f32 %v609_v58, 0.0  ;;  %v588_v63 = vadd.f32 %v587_v60, %v538_v59  ;;  %v520_v3 = vpop.f32.mrf.mxu0 }
  0xff   : > { %v569_v4 = vpop.f32.mrf.mxu1 }
 0x100   : > { %v865_v1 = vpack.c.bf16 %v613_v62, %v612_v61  ;;  %v598_v6 = vmax.f32 %v578_v0, %v588_v63  ;;  %v570_v8 = vadd.f32 %v569_v4, %v520_v3 }
 0x102   : > { %866 = vst [vmem:[%s268_s23] sm:$0xff] %v865_v1   ;;  %v602_v13 = vmax.f32 %v594_v7, %v598_v6  ;;  %v595_v15 = vmax.f32 %v560_v11, %v570_v8 }
 0x104   : > { %v540_v9 = vpop.f32.mrf.mxu2  ;;  %v610_v17 = vadd.f32 %v913_v50, %v602_v13 }
 0x105   : > { %v589_v10 = vpop.f32.mrf.mxu3 }
 0x106   : > { %v590_v14 = vadd.f32 %v589_v10, %v540_v9  ;;  %v614_v20 = vmax.f32 %v610_v17, 0.0 }
 0x108   : > { %v599_v16 = vmax.f32 %v580_v12, %v590_v14 }
 0x10a   : > { %v603_v18 = vmax.f32 %v595_v15, %v599_v16 }
 0x10c   : > { %v611_v19 = vadd.f32 %v913_v50, %v603_v18 }
 0x10e   : > { %v615_v21 = vmax.f32 %v611_v19, 0.0 }
 0x110   : > { %v870_v22 = vpack.c.bf16 %v615_v21, %v614_v20 }
 0x112   : > { %872 = vst [vmem:[%s268_s23 + $0x8] sm:$0xff] %v870_v22  }
 0x113 PF: > { %p10_p9 = scmp.ge.s32.totalorder %s975_s16, 4   ;;  %s1117_s12 = smov %s932_s13 }
 0x114   : > { %s1118_s13 = smov %s984_s19  ;;  %s1119_s14 = smov %s975_s16 }
 0x115   :  { %12 = sbr.rel (!%p10_p9) target bundleno = 2 (0x2), region = 105 }

// kernel: hyrax_cnn_forward.5
= control target key start
LH: loop header
LB: loop body
LE: loop exit
PB: predicated region body
PF: predicated region fallthrough
CT: control target
= control target key end

     0   :  { %s1028_s1 = inlined_call_operand.vmem [shape: bf16[512,128], index: 1, kind: input, shape index: {}]   ;;  %s1029_s2 = inlined_call_operand.vmem [shape: f32[1,128], index: 2, kind: input, shape index: {}]   ;;  %s1030_s0 = inlined_call_operand.vmem [shape: bf16[16,512], index: 0, kind: input, shape index: {}]   ;;  %s1031_s3 = inlined_call_operand.vmem [shape: bf16[128,128], index: 3, kind: input, shape index: {}]   ;;  %s1032_s4 = inlined_call_operand.vmem [shape: f32[1,128], index: 4, kind: input, shape index: {}]   ;;  %s1033_s5 = inlined_call_operand.vmem [shape: bf16[128,128], index: 5, kind: input, shape index: {}]   ;;  %s1034_s6 = inlined_call_operand.vmem [shape: f32[1,128], index: 6, kind: input, shape index: {}]   ;;  %s1035_s7 = inlined_call_operand.vmem [shape: f32[16,128], index: 7, kind: output, shape index: {}]  }
   0x1   :  { %v761_v0 = vld [vmem:[%s1028_s1 + $0x38] sm:$0xff]  ;;  %v760_v4 = vld [vmem:[%s1028_s1 + $0x30] sm:$0xff]  ;;  %v759_v8 = vld [vmem:[%s1028_s1 + $0x28] sm:$0xff] }
   0x2   :  { %v769_v1 = vld [vmem:[%s1028_s1 + $0x78] sm:$0xff]  ;;  %310 = vmatpush.bf16.msra.mxu0 %v761_v0  ;;  %v768_v5 = vld [vmem:[%s1028_s1 + $0x70] sm:$0xff]  ;;  %v767_v9 = vld [vmem:[%s1028_s1 + $0x68] sm:$0xff] }
   0x3   :  { %v777_v2 = vld [vmem:[%s1028_s1 + $0xb8] sm:$0xff]  ;;  %324 = vmatpush.bf16.msra.mxu1 %v769_v1  ;;  %v776_v6 = vld [vmem:[%s1028_s1 + $0xb0] sm:$0xff]  ;;  %v775_v10 = vld [vmem:[%s1028_s1 + $0xa8] sm:$0xff] }
   0x4   :  { %v785_v3 = vld [vmem:[%s1028_s1 + $0xf8] sm:$0xff]  ;;  %338 = vmatpush.bf16.msra.mxu2 %v777_v2  ;;  %v784_v7 = vld [vmem:[%s1028_s1 + $0xf0] sm:$0xff]  ;;  %v783_v11 = vld [vmem:[%s1028_s1 + $0xe8] sm:$0xff] }
   0x5   :  { %352 = vmatpush.bf16.msra.mxu3 %v785_v3  ;;  %v758_v12 = vld [vmem:[%s1028_s1 + $0x20] sm:$0xff]  ;;  %v757_v16 = vld [vmem:[%s1028_s1 + $0x18] sm:$0xff]  ;;  %v756_v20 = vld [vmem:[%s1028_s1 + $0x10] sm:$0xff] }
   0x6   :  { %311 = vmatpush.bf16.msra.mxu0 %v760_v4  ;;  %v766_v13 = vld [vmem:[%s1028_s1 + $0x60] sm:$0xff]  ;;  %v765_v17 = vld [vmem:[%s1028_s1 + $0x58] sm:$0xff]  ;;  %v764_v21 = vld [vmem:[%s1028_s1 + $0x50] sm:$0xff] }
   0x7   :  { %325 = vmatpush.bf16.msra.mxu1 %v768_v5  ;;  %v774_v14 = vld [vmem:[%s1028_s1 + $0xa0] sm:$0xff]  ;;  %v773_v18 = vld [vmem:[%s1028_s1 + $0x98] sm:$0xff]  ;;  %v772_v22 = vld [vmem:[%s1028_s1 + $0x90] sm:$0xff] }
   0x8   :  { %339 = vmatpush.bf16.msra.mxu2 %v776_v6  ;;  %v782_v15 = vld [vmem:[%s1028_s1 + $0xe0] sm:$0xff]  ;;  %v781_v19 = vld [vmem:[%s1028_s1 + $0xd8] sm:$0xff]  ;;  %v780_v23 = vld [vmem:[%s1028_s1 + $0xd0] sm:$0xff] }
   0x9   :  { %353 = vmatpush.bf16.msra.mxu3 %v784_v7  ;;  %v755_v24 = vld [vmem:[%s1028_s1 + $0x8] sm:$0xff]  ;;  %v754_v28 = vld [vmem:[%s1028_s1] sm:$0xff]  ;;  %v752_v33 = vld [vmem:[%s1030_s0 + $0xc] sm:$0xf0] }
   0xa   :  { %312 = vmatpush.bf16.msra.mxu0 %v759_v8  ;;  %v763_v25 = vld [vmem:[%s1028_s1 + $0x48] sm:$0xff]  ;;  %v762_v29 = vld [vmem:[%s1028_s1 + $0x40] sm:$0xff]  ;;  %v546_v35 = vld [vmem:[%s1030_s0 + $0x10] sm:$0xf0] }
   0xb   :  { %326 = vmatpush.bf16.msra.mxu1 %v767_v9  ;;  %v771_v26 = vld [vmem:[%s1028_s1 + $0x88] sm:$0xff]  ;;  %v770_v30 = vld [vmem:[%s1028_s1 + $0x80] sm:$0xff]  ;;  %v753_v37 = vld [vmem:[%s1030_s0 + $0x14] sm:$0xf0] }
   0xc   :  { %340 = vmatpush.bf16.msra.mxu2 %v775_v10  ;;  %v779_v27 = vld [vmem:[%s1028_s1 + $0xc8] sm:$0xff]  ;;  %v778_v31 = vld [vmem:[%s1028_s1 + $0xc0] sm:$0xff]  ;;  %v554_v39 = vld [vmem:[%s1030_s0 + $0x18] sm:$0xf0] }
   0xd   :  { %354 = vmatpush.bf16.msra.mxu3 %v783_v11  ;;  %v544_v32 = vld [vmem:[%s1030_s0] sm:$0xf]  ;;  %v750_v34 = vld [vmem:[%s1030_s0 + $0x4] sm:$0xf]  ;;  %v552_v36 = vld [vmem:[%s1030_s0 + $0x8] sm:$0xf] }
   0xe   :  { %313 = vmatpush.bf16.msra.mxu0 %v758_v12  ;;  %v751_v38 = vld [vmem:[%s1030_s0 + $0xc] sm:$0xf]  ;;  %v793_v40 = vld [vmem:[%s1031_s3 + $0x38] sm:$0xff]  ;;  %v545_v41 = vor.u32 %v752_v33, %v544_v32  ;;  %v549_v42 = vor.u32 %v750_v34, %v546_v35  ;;  %v553_v43 = vor.u32 %v753_v37, %v552_v36  ;;  %v792_v45 = vld [vmem:[%s1031_s3 + $0x30] sm:$0xff] }
   0xf   :  { %327 = vmatpush.bf16.msra.mxu1 %v766_v13  ;;  %v557_v44 = vor.u32 %v751_v38, %v554_v39  ;;  %v791_v46 = vld [vmem:[%s1031_s3 + $0x28] sm:$0xff]  ;;  %v790_v47 = vld [vmem:[%s1031_s3 + $0x20] sm:$0xff]  ;;  %v789_v48 = vld [vmem:[%s1031_s3 + $0x18] sm:$0xff] }
  0x10   :  { %341 = vmatpush.bf16.msra.mxu2 %v774_v14  ;;  %v788_v49 = vld [vmem:[%s1031_s3 + $0x10] sm:$0xff]  ;;  %v787_v50 = vld [vmem:[%s1031_s3 + $0x8] sm:$0xff]  ;;  %v786_v51 = vld [vmem:[%s1031_s3] sm:$0xff] }
  0x11   :  { %355 = vmatpush.bf16.msra.mxu3 %v782_v15  ;;  %v801_v52 = vld [vmem:[%s1033_s5 + $0x38] sm:$0xff]  ;;  %v800_v53 = vld [vmem:[%s1033_s5 + $0x30] sm:$0xff]  ;;  %v799_v54 = vld [vmem:[%s1033_s5 + $0x28] sm:$0xff] }
  0x12   :  { %314 = vmatpush.bf16.msra.mxu0 %v757_v16  ;;  %v802_v55 = vld [vmem:[%s1029_s2] ss:$0 sm:$0xff]  ;;  %v797_v12 = vld [vmem:[%s1033_s5 + $0x18] sm:$0xff]  ;;  %v796_v13 = vld [vmem:[%s1033_s5 + $0x10] sm:$0xff] }
  0x13   :  { %328 = vmatpush.bf16.msra.mxu1 %v765_v17  ;;  %v798_v57 = vld [vmem:[%s1033_s5 + $0x20] sm:$0xff]  ;;  %v795_v14 = vld [vmem:[%s1033_s5 + $0x8] sm:$0xff] }
  0x14   :  { %342 = vmatpush.bf16.msra.mxu2 %v773_v18  ;;  %v794_v15 = vld [vmem:[%s1033_s5] sm:$0xff] }
  0x15   :  { %356 = vmatpush.bf16.msra.mxu3 %v781_v19  ;;  %v803_v17 = vld [vmem:[%s1032_s4] ss:$0 sm:$0xff] }
  0x16   :  { %315 = vmatpush.bf16.msra.mxu0 %v756_v20 }
  0x17   :  { %329 = vmatpush.bf16.msra.mxu1 %v764_v21 }
  0x18   :  { %343 = vmatpush.bf16.msra.mxu2 %v772_v22 }
  0x19   :  { %357 = vmatpush.bf16.msra.mxu3 %v780_v23 }
  0x1a   :  { %316 = vmatpush.bf16.msra.mxu0 %v755_v24  ;;  %v804_v24 = vld [vmem:[%s1034_s6] ss:$0 sm:$0xff] }
  0x1b   :  { %330 = vmatpush.bf16.msra.mxu1 %v763_v25 }
  0x1c   :  { %344 = vmatpush.bf16.msra.mxu2 %v771_v26 }
  0x1d   :  { %358 = vmatpush.bf16.msra.mxu3 %v779_v27 }
  0x1e   :  { %317 = vmatpush.bf16.msra.mxu0 %v754_v28 }
  0x1f   :  { %331 = vmatpush.bf16.msra.mxu1 %v762_v29 }
  0x20   :  { %345 = vmatpush.bf16.msra.mxu2 %v770_v30 }
  0x21   :  { %359 = vmatpush.bf16.msra.mxu3 %v778_v31  ;;  %318 = vmatmul.bf16.vlgmr.msra.gmra.mxu0 %v545_v41 }
  0x22   :  { %437 = vmatpush.bf16.msrb.mxu0 %v793_v40  ;;  %332 = vmatmul.bf16.vlgmr.msra.gmra.mxu1 %v549_v42 }
  0x23   :  { %346 = vmatmul.bf16.vlgmr.msra.gmra.mxu2 %v553_v43  ;;  %522 = vmatpush.bf16.msrb.mxu1 %v801_v52 }
  0x24   :  { %360 = vmatmul.bf16.vlgmr.msra.gmra.mxu3 %v557_v44 }
  0x26   :  { %438 = vmatpush.bf16.msrb.mxu0 %v792_v45 }
  0x27   :  { %523 = vmatpush.bf16.msrb.mxu1 %v800_v53 }
  0x2a   :  { %439 = vmatpush.bf16.msrb.mxu0 %v791_v46 }
  0x2b   :  { %524 = vmatpush.bf16.msrb.mxu1 %v799_v54 }
  0x2e   :  { %440 = vmatpush.bf16.msrb.mxu0 %v790_v47 }
  0x2f   :  { %525 = vmatpush.bf16.msrb.mxu1 %v798_v57 }
  0x32   :  { %441 = vmatpush.bf16.msrb.mxu0 %v789_v48 }
  0x33   :  { %526 = vmatpush.bf16.msrb.mxu1 %v797_v12 }
  0x36   :  { %442 = vmatpush.bf16.msrb.mxu0 %v788_v49 }
  0x37   :  { %527 = vmatpush.bf16.msrb.mxu1 %v796_v13 }
  0x3a   :  { %443 = vmatpush.bf16.msrb.mxu0 %v787_v50 }
  0x3b   :  { %528 = vmatpush.bf16.msrb.mxu1 %v795_v14 }
  0x3e   :  { %444 = vmatpush.bf16.msrb.mxu0 %v786_v51 }
  0x3f   :  { %529 = vmatpush.bf16.msrb.mxu1 %v794_v15 }
  0x9e   :  { %v319_v56 = vpop.f32.mrf.mxu0 }
  0x9f   :  { %v333_v58 = vpop.f32.mrf.mxu1  ;;  %v320_v59 = vadd.f32 %v802_v55, %v319_v56 }
  0xa1   :  { %v334_v62 = vadd.f32 %v333_v58, %v320_v59 }
  0xa6   :  { %v347_v60 = vpop.f32.mrf.mxu2  ;;  %v321_v63 = vpop.f32.mrf.mxu0 }
  0xa7   :  { %v361_v61 = vpop.f32.mrf.mxu3  ;;  %v322_v0 = vadd.f32 %v802_v55, %v321_v63  ;;  %v348_v1 = vadd.f32 %v347_v60, %v334_v62  ;;  %v335_v2 = vpop.f32.mrf.mxu1 }
  0xa9   :  { %v336_v3 = vadd.f32 %v335_v2, %v322_v0  ;;  %v362_v5 = vadd.f32 %v361_v61, %v348_v1 }
  0xab   :  { %v366_v9 = vmax.f32 %v362_v5, 0.0 }
  0xae   :  { %v349_v4 = vpop.f32.mrf.mxu2 }
  0xaf   :  { %v350_v6 = vadd.f32 %v349_v4, %v336_v3  ;;  %v363_v7 = vpop.f32.mrf.mxu3 }
  0xb1   :  { %v364_v8 = vadd.f32 %v363_v7, %v350_v6 }
  0xb3   :  { %v367_v10 = vmax.f32 %v364_v8, 0.0 }
  0xb5   :  { %v368_v11 = vpack.c.bf16 %v367_v10, %v366_v9 }
  0xb7   :  { %445 = vmatmul.bf16.vlgmr.msrb.gmra.mxu0 %v368_v11 }
 0x134   :  { %v446_v16 = vpop.f32.mrf.mxu0 }
 0x135   :  { %v447_v18 = vadd.f32 %v803_v17, %v446_v16 }
 0x137   :  { %v451_v21 = vmax.f32 %v447_v18, 0.0 }
 0x13c   :  { %v448_v19 = vpop.f32.mrf.mxu0 }
 0x13d   :  { %v449_v20 = vadd.f32 %v803_v17, %v448_v19 }
 0x13f   :  { %v452_v22 = vmax.f32 %v449_v20, 0.0 }
 0x141   :  { %v453_v23 = vpack.c.bf16 %v452_v22, %v451_v21 }
 0x143   :  { %530 = vmatmul.bf16.vlgmr.msrb.gmra.mxu1 %v453_v23 }
 0x1c0   :  { %v531_v25 = vpop.f32.mrf.mxu1 }
 0x1c1   :  { %v532_v26 = vadd.f32 %v804_v24, %v531_v25 }
 0x1c3   :  { %536 = vst [vmem:[%s1035_s7] sm:$0xff] %v532_v26 }
 0x1c8   :  { %v533_v27 = vpop.f32.mrf.mxu1 }
 0x1c9   :  { %v534_v28 = vadd.f32 %v804_v24, %v533_v27 }
 0x1cb   :  { %537 = vst [vmem:[%s1035_s7 + $0x8] sm:$0xff] %v534_v28 }

</bundles_post_ra>
